<compile_context>
chip_gen: v6e
topology: v6e:2x2x1
jax: 0.10.0
libtpu: 0.0.40
codegen_flags: <defaults>
</compile_context>

<pallas_src>
import math

import jax
import jax.numpy as jnp
from jax import lax
from jax.experimental import pallas as pl
from jax.experimental.pallas import tpu as pltpu

IN_DIM = 23
SPACE_DIM = 8
PROP_DIM = 8
SH_DIM = SPACE_DIM + PROP_DIM          # fused lin_s|lin_h width
AGG_DIM = IN_DIM + 2 * PROP_DIM        # [x, mean, max] width for the fused output proj
K = 2
TM = 128                               # query-node row tile
EPS = 1e-6


def _gravnet_tile(x_tile, s_tile, h_tile, s_full, h_full, neigh_ok, w_out, b_out):
    """One GravNetConv for a tile of query rows against the full (padded) cloud.

    x_tile:(TM,F) s_tile:(TM,S) h_tile:(TM,P) s_full:(Np,S) h_full:(Np,P)
    neigh_ok:(TM,Np) bool -- True where column j is a valid non-self, same-segment neighbour.
    """
    tm, np_ = neigh_ok.shape

    # Reduced distance: argmin_j ||s_i - s_j||^2 == argmin_j (||s_j||^2 - 2 s_i.s_j).
    sq_row = jnp.sum(s_tile * s_tile, axis=-1, keepdims=True)                    # (TM,1)
    sq_col = lax.dot_general(jnp.ones((1, SPACE_DIM), jnp.float32), s_full * s_full,
                             (((1,), (1,)), ((), ())),
                             preferred_element_type=jnp.float32)                 # (1,Np)
    gram = lax.dot_general(s_tile, s_full, (((1,), (1,)), ((), ())),
                           preferred_element_type=jnp.float32)                   # (TM,Np)
    d_red = jnp.where(neigh_ok, sq_col - 2.0 * gram, jnp.inf)

    col = lax.broadcasted_iota(jnp.int32, (tm, np_), 1)
    h_bf = h_full.astype(jnp.bfloat16)   # MXU operand only; accumulation stays f32

    # Self edge (always among the k nearest: d=0, weight exp(0)=1) handled exactly.
    sum_agg = h_tile
    max_agg = h_tile
    cnt = jnp.ones_like(sq_row)          # actual neighbour count (starts with self)

    # Remaining K-1 nearest neighbours (K is tiny & static -> unrolled).
    for it in range(K - 1):
        rowmin = jnp.min(d_red, axis=-1, keepdims=True)                          # (TM,1)
        amin = jnp.min(jnp.where(d_red <= rowmin, col, np_),
                       axis=-1, keepdims=True)                                   # first argmin
        onehot = jnp.where(col == amin, 1.0, 0.0)                                # (TM,Np)
        hj = jnp.dot(onehot.astype(jnp.bfloat16), h_bf,
                     preferred_element_type=jnp.float32)                         # gather h_j
        d_true = jnp.maximum(sq_row + rowmin, 0.0)                               # exact dist
        w = jnp.exp(-10.0 * d_true)                                              # 0 if no nbr
        msg = w * hj
        valid = rowmin < jnp.inf                                                 # (TM,1)
        sum_agg = sum_agg + msg
        max_agg = jnp.where(valid, jnp.maximum(max_agg, msg), max_agg)
        cnt = cnt + valid.astype(jnp.float32)
        if it + 1 < K - 1:
            d_red = jnp.where(col == amin, jnp.inf, d_red)

    mean_agg = sum_agg * (1.0 / cnt)
    # Fused lin_out1 + lin_out2: concat([x, mean, max]) @ vstack([W1, W2_mean, W2_max]) + b2.
    feats = jnp.concatenate([x_tile, mean_agg, max_agg], axis=-1)                # (TM,39)
    return jnp.dot(feats, w_out, preferred_element_type=jnp.float32) + b_out


def _layer1_kernel(x_ref, segr_ref, segc_ref,
                   wsh1_ref, bsh1_ref, wout1_ref, bout1_ref, wsh2_ref, bsh2_ref,
                   lat_ref, sh2_ref):
    """GravNet layer 1 for one query-row tile; also emits layer 2's fused s|h projection."""
    tm = lat_ref.shape[0]
    np_ = x_ref.shape[0]
    row_start = pl.multiple_of(pl.program_id(0) * tm, tm)

    # Full-cloud fused projection (tiny (Np,F)@(F,16); recomputed per tile so the grid
    # axis stays embarrassingly parallel — no cross-step state).
    x_full = x_ref[...]
    sh_full = jnp.dot(x_full, wsh1_ref[...], preferred_element_type=jnp.float32) + bsh1_ref[...]
    s_full = sh_full[:, :SPACE_DIM]
    h_full = sh_full[:, SPACE_DIM:]

    x_tile = x_ref[pl.ds(row_start, tm), :]
    sh_tile = jnp.dot(x_tile, wsh1_ref[...], preferred_element_type=jnp.float32) + bsh1_ref[...]
    s_tile = sh_tile[:, :SPACE_DIM]
    h_tile = sh_tile[:, SPACE_DIM:]

    col = lax.broadcasted_iota(jnp.int32, (tm, np_), 1)
    row = row_start + lax.broadcasted_iota(jnp.int32, (tm, np_), 0)
    same_seg = segr_ref[...] == segc_ref[...]            # respects row_splits (pads are -1)
    neigh_ok = jnp.logical_and(same_seg, col != row)

    lat = _gravnet_tile(x_tile, s_tile, h_tile, s_full, h_full, neigh_ok,
                        wout1_ref[...], bout1_ref[...])
    lat_ref[...] = lat
    # Layer-2 fused s|h projection emitted here (pointwise per row) to save a pass.
    sh2_ref[...] = jnp.dot(lat, wsh2_ref[...], preferred_element_type=jnp.float32) + bsh2_ref[...]


def _layer2_kernel(x_ref, sh_ref, segr_ref, segc_ref,
                   wout2_ref, bout2_ref,
                   wb1_ref, bb1_ref, wb2_ref, bb2_ref, wb3_ref, bb3_ref,
                   lat_ref, beta_ref):
    """GravNet layer 2 (s|h precomputed by layer 1) + beta MLP for one query-row tile."""
    tm = lat_ref.shape[0]
    np_ = x_ref.shape[0]
    row_start = pl.multiple_of(pl.program_id(0) * tm, tm)

    sh_full = sh_ref[...]
    s_full = sh_full[:, :SPACE_DIM]
    h_full = sh_full[:, SPACE_DIM:]

    sh_tile = sh_ref[pl.ds(row_start, tm), :]
    s_tile = sh_tile[:, :SPACE_DIM]
    h_tile = sh_tile[:, SPACE_DIM:]
    x_tile = x_ref[pl.ds(row_start, tm), :]

    col = lax.broadcasted_iota(jnp.int32, (tm, np_), 1)
    row = row_start + lax.broadcasted_iota(jnp.int32, (tm, np_), 0)
    same_seg = segr_ref[...] == segc_ref[...]
    neigh_ok = jnp.logical_and(same_seg, col != row)

    lat = _gravnet_tile(x_tile, s_tile, h_tile, s_full, h_full, neigh_ok,
                        wout2_ref[...], bout2_ref[...])
    lat_ref[...] = lat

    # Beta head: 23 -> 11 -> 5 -> 1, ReLU / ReLU / Sigmoid, then clamp.
    z = jnp.maximum(jnp.dot(lat, wb1_ref[...], preferred_element_type=jnp.float32)
                    + bb1_ref[...], 0.0)
    z = jnp.maximum(jnp.dot(z, wb2_ref[...], preferred_element_type=jnp.float32)
                    + bb2_ref[...], 0.0)
    beta = jax.nn.sigmoid(jnp.dot(z, wb3_ref[...], preferred_element_type=jnp.float32)
                          + bb3_ref[...])
    beta_ref[...] = jnp.clip(beta, EPS, 1.0 - EPS)


# ---------------- parameter construction (deterministic, PyTorch-style init) --------------


def _uniform(key, shape, fan_in):
    bound = 1.0 / math.sqrt(fan_in)
    return jax.random.uniform(key, shape, jnp.float32, -bound, bound)


def init_params(key):
    p = {}
    for layer in (1, 2):
        key, *ks = jax.random.split(key, 9)
        ws = _uniform(ks[0], (IN_DIM, SPACE_DIM), IN_DIM)
        bs = _uniform(ks[1], (1, SPACE_DIM), IN_DIM)
        wh = _uniform(ks[2], (IN_DIM, PROP_DIM), IN_DIM)
        bh = _uniform(ks[3], (1, PROP_DIM), IN_DIM)
        woa = _uniform(ks[4], (IN_DIM, IN_DIM), IN_DIM)                 # lin_out1 (no bias)
        wobm = _uniform(ks[5], (PROP_DIM, IN_DIM), 2 * PROP_DIM)        # lin_out2[:P]
        wobx = _uniform(ks[6], (PROP_DIM, IN_DIM), 2 * PROP_DIM)        # lin_out2[P:]
        bo = _uniform(ks[7], (1, IN_DIM), 2 * PROP_DIM)
        # Host-side fusion of the tiny projections (one matmul each in-kernel).
        p[f"w_sh{layer}"] = jnp.concatenate([ws, wh], axis=1)           # (F, 16)
        p[f"b_sh{layer}"] = jnp.concatenate([bs, bh], axis=1)           # (1, 16)
        p[f"w_out{layer}"] = jnp.concatenate([woa, wobm, wobx], axis=0)  # (39, F)
        p[f"b_out{layer}"] = bo                                          # (1, F)
    h1, h2 = IN_DIM // 2, IN_DIM // 4
    key, *ks = jax.random.split(key, 7)
    p["w_b1"] = _uniform(ks[0], (IN_DIM, h1), IN_DIM)
    p["b_b1"] = _uniform(ks[1], (1, h1), IN_DIM)
    p["w_b2"] = _uniform(ks[2], (h1, h2), h1)
    p["b_b2"] = _uniform(ks[3], (1, h2), h1)
    p["w_b3"] = _uniform(ks[4], (h2, 1), h2)
    p["b_b3"] = _uniform(ks[5], (1, 1), h2)
    return p


# ---------------- wrapper -----------------------------------------------------------------


def gravnet_gnn(x, row_splits, params):
    n = x.shape[0]
    np_ = ((n + TM - 1) // TM) * TM                      # pad to full 128-lane tiles
    pad = np_ - n

    # Per-node segment ids from row_splits; padded nodes get -1 so kNN never selects them.
    internal = row_splits[1:-1]
    seg = jnp.sum(jnp.arange(n)[:, None] >= internal[None, :], axis=1).astype(jnp.int32)
    seg = jnp.concatenate([seg, jnp.full((pad,), -1, jnp.int32)], axis=0)
    seg_rows = seg.reshape(np_, 1)
    seg_cols = seg.reshape(1, np_)
    x_p = jnp.pad(x.astype(jnp.float32), ((0, pad), (0, 0)))

    grid = (np_ // TM,)
    full = lambda shape: pl.BlockSpec(shape, lambda i: (0,) * len(shape))      # pinned/resident
    tiled = lambda shape: pl.BlockSpec(shape, lambda i: (i,) + (0,) * (len(shape) - 1))
    cparams = pltpu.CompilerParams(
        dimension_semantics=("parallel",),               # row tiles are independent (megacore)
        vmem_limit_bytes=48 * 1024 * 1024)               # within v7x's 64 MiB physical VMEM

    p = params
    lat1, sh2 = pl.pallas_call(
        _layer1_kernel,
        grid=grid,
        in_specs=[full((np_, IN_DIM)),                   # x (full cloud, resident)
                  tiled((TM, 1)),                        # segment ids for query rows
                  full((1, np_)),                        # segment ids for columns
                  full(p["w_sh1"].shape), full(p["b_sh1"].shape),
                  full(p["w_out1"].shape), full(p["b_out1"].shape),
                  full(p["w_sh2"].shape), full(p["b_sh2"].shape)],
        out_specs=(tiled((TM, IN_DIM)), tiled((TM, SH_DIM))),
        out_shape=(jax.ShapeDtypeStruct((np_, IN_DIM), jnp.float32),
                   jax.ShapeDtypeStruct((np_, SH_DIM), jnp.float32)),
        compiler_params=cparams,
    )(x_p, seg_rows, seg_cols, p["w_sh1"], p["b_sh1"], p["w_out1"], p["b_out1"],
      p["w_sh2"], p["b_sh2"])

    lat2, beta = pl.pallas_call(
        _layer2_kernel,
        grid=grid,
        in_specs=[full((np_, IN_DIM)),                   # layer-1 features (full, resident)
                  full((np_, SH_DIM)),                   # layer-2 s|h projection (full)
                  tiled((TM, 1)),
                  full((1, np_)),
                  full(p["w_out2"].shape), full(p["b_out2"].shape),
                  full(p["w_b1"].shape), full(p["b_b1"].shape),
                  full(p["w_b2"].shape), full(p["b_b2"].shape),
                  full(p["w_b3"].shape), full(p["b_b3"].shape)],
        out_specs=(tiled((TM, IN_DIM)), tiled((TM, 1))),
        out_shape=(jax.ShapeDtypeStruct((np_, IN_DIM), jnp.float32),
                   jax.ShapeDtypeStruct((np_, 1), jnp.float32)),
        compiler_params=cparams,
    )(lat1, sh2, seg_rows, seg_cols, p["w_out2"], p["b_out2"],
      p["w_b1"], p["b_b1"], p["w_b2"], p["b_b2"], p["w_b3"], p["b_b3"])

    return {"B": beta[:n], "H": lat2[:n]}


if __name__ == "__main__":
    key = jax.random.PRNGKey(0)
    kx, kp = jax.random.split(key)

    N = 64
    x = jax.random.normal(kx, (N, IN_DIM), jnp.float32)
    row_splits = jnp.array([0, 40, N], dtype=jnp.int32)   # two events in the batch

    params = init_params(kp)
    out = gravnet_gnn(x, row_splits, params)
    jax.block_until_ready(out)

    assert out["B"].shape == (N, 1) and out["H"].shape == (N, IN_DIM)
    assert bool(jnp.all(jnp.isfinite(out["H"])))
    assert bool(jnp.all(out["B"] >= EPS)) and bool(jnp.all(out["B"] <= 1 - EPS))
    print("KERNEL_OK")
</pallas_src>

<mosaic_0001>
module attributes {stable_mosaic.version = 11 : i64} {
  func.func @_layer1_kernel(%arg0: i32, %arg1: memref<128x23xf32, #tpu.memory_space<vmem>>, %arg2: memref<128x1xi32, #tpu.memory_space<vmem>>, %arg3: memref<1x128xi32, #tpu.memory_space<vmem>>, %arg4: memref<23x16xf32, #tpu.memory_space<vmem>>, %arg5: memref<1x16xf32, #tpu.memory_space<vmem>>, %arg6: memref<39x23xf32, #tpu.memory_space<vmem>>, %arg7: memref<1x23xf32, #tpu.memory_space<vmem>>, %arg8: memref<23x16xf32, #tpu.memory_space<vmem>>, %arg9: memref<1x16xf32, #tpu.memory_space<vmem>>, %arg10: memref<128x23xf32, #tpu.memory_space<vmem>>, %arg11: memref<128x16xf32, #tpu.memory_space<vmem>>) attributes {dimension_semantics = [#tpu.dimension_semantics<parallel>], iteration_bounds = array<i64: 1>, scalar_prefetch = 0 : i64, scratch_operands = 0 : i64, tpu.core_type = #tpu.core_type<tc>, window_params = [{pipeline_mode = #tpu.pipeline_mode<synchronous>, transform_indices = @transform_0, window_bounds = array<i64: 128, 23>}, {transform_indices = @transform_1, window_bounds = array<i64: 128, 1>}, {pipeline_mode = #tpu.pipeline_mode<synchronous>, transform_indices = @transform_2, window_bounds = array<i64: 1, 128>}, {pipeline_mode = #tpu.pipeline_mode<synchronous>, transform_indices = @transform_3, window_bounds = array<i64: 23, 16>}, {pipeline_mode = #tpu.pipeline_mode<synchronous>, transform_indices = @transform_4, window_bounds = array<i64: 1, 16>}, {pipeline_mode = #tpu.pipeline_mode<synchronous>, transform_indices = @transform_5, window_bounds = array<i64: 39, 23>}, {pipeline_mode = #tpu.pipeline_mode<synchronous>, transform_indices = @transform_6, window_bounds = array<i64: 1, 23>}, {pipeline_mode = #tpu.pipeline_mode<synchronous>, transform_indices = @transform_7, window_bounds = array<i64: 23, 16>}, {pipeline_mode = #tpu.pipeline_mode<synchronous>, transform_indices = @transform_8, window_bounds = array<i64: 1, 16>}, {transform_indices = @transform_9, window_bounds = array<i64: 128, 23>}, {transform_indices = @transform_10, window_bounds = array<i64: 128, 16>}]} {
    %c128_i32 = arith.constant 128 : i32
    %0 = arith.muli %arg0, %c128_i32 : i32
    %1 = tpu.assume_multiple %0, 128 : i32
    %c0 = arith.constant 0 : index
    %c0_0 = arith.constant 0 : index
    %2 = vector.load %arg1[%c0, %c0_0] : memref<128x23xf32, #tpu.memory_space<vmem>>, vector<128x23xf32>
    %c0_1 = arith.constant 0 : index
    %c0_2 = arith.constant 0 : index
    %3 = vector.load %arg4[%c0_1, %c0_2] : memref<23x16xf32, #tpu.memory_space<vmem>>, vector<23x16xf32>
    %cst = arith.constant dense<0.000000e+00> : vector<128x16xf32>
    %4 = tpu.matmul %2, %3, %cst {dimension_numbers = #tpu.dot_dimension_numbers<[1], [0], [0], [1], [0, 0, 1, 1], [], []>} : vector<128x23xf32>, vector<23x16xf32>, vector<128x16xf32> -> vector<128x16xf32>
    %c0_3 = arith.constant 0 : index
    %c0_4 = arith.constant 0 : index
    %5 = vector.load %arg5[%c0_3, %c0_4] : memref<1x16xf32, #tpu.memory_space<vmem>>, vector<1x16xf32>
    %6 = vector.broadcast %5 : vector<1x16xf32> to vector<128x16xf32>
    %7 = arith.addf %4, %6 : vector<128x16xf32>
    %8 = vector.extract_strided_slice %7 {offsets = [0, 0], sizes = [128, 8], strides = [1, 1]} : vector<128x16xf32> to vector<128x8xf32>
    %9 = vector.extract_strided_slice %7 {offsets = [0, 8], sizes = [128, 8], strides = [1, 1]} : vector<128x16xf32> to vector<128x8xf32>
    %10 = arith.index_cast %1 : i32 to index
    %c0_5 = arith.constant 0 : index
    %11 = vector.load %arg1[%10, %c0_5] : memref<128x23xf32, #tpu.memory_space<vmem>>, vector<128x23xf32>
    %c0_6 = arith.constant 0 : index
    %c0_7 = arith.constant 0 : index
    %12 = vector.load %arg4[%c0_6, %c0_7] : memref<23x16xf32, #tpu.memory_space<vmem>>, vector<23x16xf32>
    %cst_8 = arith.constant dense<0.000000e+00> : vector<128x16xf32>
    %13 = tpu.matmul %11, %12, %cst_8 {dimension_numbers = #tpu.dot_dimension_numbers<[1], [0], [0], [1], [0, 0, 1, 1], [], []>} : vector<128x23xf32>, vector<23x16xf32>, vector<128x16xf32> -> vector<128x16xf32>
    %c0_9 = arith.constant 0 : index
    %c0_10 = arith.constant 0 : index
    %14 = vector.load %arg5[%c0_9, %c0_10] : memref<1x16xf32, #tpu.memory_space<vmem>>, vector<1x16xf32>
    %15 = vector.broadcast %14 : vector<1x16xf32> to vector<128x16xf32>
    %16 = arith.addf %13, %15 : vector<128x16xf32>
    %17 = vector.extract_strided_slice %16 {offsets = [0, 0], sizes = [128, 8], strides = [1, 1]} : vector<128x16xf32> to vector<128x8xf32>
    %18 = vector.extract_strided_slice %16 {offsets = [0, 8], sizes = [128, 8], strides = [1, 1]} : vector<128x16xf32> to vector<128x8xf32>
    %19 = tpu.iota {dimensions = array<i32: 1>} : vector<128x128xi32>
    %20 = tpu.iota {dimensions = array<i32: 0>} : vector<128x128xi32>
    %21 = vector.broadcast %1 : i32 to vector<128x128xi32>
    %22 = arith.addi %21, %20 : vector<128x128xi32>
    %c0_11 = arith.constant 0 : index
    %c0_12 = arith.constant 0 : index
    %23 = vector.load %arg2[%c0_11, %c0_12] : memref<128x1xi32, #tpu.memory_space<vmem>>, vector<128x1xi32>
    %c0_13 = arith.constant 0 : index
    %c0_14 = arith.constant 0 : index
    %24 = vector.load %arg3[%c0_13, %c0_14] : memref<1x128xi32, #tpu.memory_space<vmem>>, vector<1x128xi32>
    %25 = vector.broadcast %23 : vector<128x1xi32> to vector<128x128xi32>
    %26 = vector.broadcast %24 : vector<1x128xi32> to vector<128x128xi32>
    %27 = arith.cmpi eq, %25, %26 : vector<128x128xi32>
    %28 = arith.cmpi ne, %19, %22 : vector<128x128xi32>
    %29 = arith.andi %27, %28 : vector<128x128xi1>
    %c0_15 = arith.constant 0 : index
    %c0_16 = arith.constant 0 : index
    %30 = vector.load %arg6[%c0_15, %c0_16] : memref<39x23xf32, #tpu.memory_space<vmem>>, vector<39x23xf32>
    %c0_17 = arith.constant 0 : index
    %c0_18 = arith.constant 0 : index
    %31 = vector.load %arg7[%c0_17, %c0_18] : memref<1x23xf32, #tpu.memory_space<vmem>>, vector<1x23xf32>
    %32 = arith.mulf %17, %17 : vector<128x8xf32>
    %cst_19 = arith.constant dense<0.000000e+00> : vector<128xf32>
    %33 = vector.multi_reduction <add>, %32, %cst_19 [1] : vector<128x8xf32> to vector<128xf32>
    %34 = vector.shape_cast %33 : vector<128xf32> to vector<128x1xf32>
    %cst_20 = arith.constant 1.000000e+00 : f32
    %35 = vector.broadcast %cst_20 : f32 to vector<1x8xf32>
    %36 = arith.mulf %8, %8 : vector<128x8xf32>
    %cst_21 = arith.constant dense<0.000000e+00> : vector<1x128xf32>
    %37 = tpu.matmul %35, %36, %cst_21 {dimension_numbers = #tpu.dot_dimension_numbers<[1], [1], [0], [0], [0, 0, 1, 0], [], []>} : vector<1x8xf32>, vector<128x8xf32>, vector<1x128xf32> -> vector<1x128xf32>
    %cst_22 = arith.constant dense<0.000000e+00> : vector<128x128xf32>
    %38 = tpu.matmul %17, %8, %cst_22 {dimension_numbers = #tpu.dot_dimension_numbers<[1], [1], [0], [0], [0, 0, 1, 0], [], []>} : vector<128x8xf32>, vector<128x8xf32>, vector<128x128xf32> -> vector<128x128xf32>
    %cst_23 = arith.constant 2.000000e+00 : f32
    %39 = vector.broadcast %cst_23 : f32 to vector<128x128xf32>
    %40 = arith.mulf %39, %38 : vector<128x128xf32>
    %41 = vector.broadcast %37 : vector<1x128xf32> to vector<128x128xf32>
    %42 = arith.subf %41, %40 : vector<128x128xf32>
    %cst_24 = arith.constant 0x7F800000 : f32
    %43 = vector.broadcast %cst_24 : f32 to vector<128x128xf32>
    %44 = arith.select %29, %42, %43 : vector<128x128xi1>, vector<128x128xf32>
    %45 = tpu.iota {dimensions = array<i32: 1>} : vector<128x128xi32>
    %46 = arith.truncf %9 : vector<128x8xf32> to vector<128x8xbf16>
    %cst_25 = arith.constant 1.000000e+00 : f32
    %47 = vector.broadcast %cst_25 : f32 to vector<128x1xf32>
    %cst_26 = arith.constant dense<0x7F800000> : vector<128xf32>
    %48 = vector.multi_reduction <minimumf>, %44, %cst_26 [1] : vector<128x128xf32> to vector<128xf32>
    %49 = vector.shape_cast %48 : vector<128xf32> to vector<128x1xf32>
    %50 = vector.broadcast %49 : vector<128x1xf32> to vector<128x128xf32>
    %51 = arith.cmpf ole, %44, %50 : vector<128x128xf32>
    %c128_i32_27 = arith.constant 128 : i32
    %52 = vector.broadcast %c128_i32_27 : i32 to vector<128x128xi32>
    %53 = arith.select %51, %45, %52 : vector<128x128xi1>, vector<128x128xi32>
    %cst_28 = arith.constant dense<2147483647> : vector<128xi32>
    %54 = vector.multi_reduction <minsi>, %53, %cst_28 [1] : vector<128x128xi32> to vector<128xi32>
    %55 = vector.shape_cast %54 : vector<128xi32> to vector<128x1xi32>
    %56 = vector.broadcast %55 : vector<128x1xi32> to vector<128x128xi32>
    %57 = arith.cmpi eq, %45, %56 : vector<128x128xi32>
    %cst_29 = arith.constant 1.000000e+00 : f32
    %cst_30 = arith.constant 0.000000e+00 : f32
    %58 = vector.broadcast %cst_29 : f32 to vector<128x128xf32>
    %59 = vector.broadcast %cst_30 : f32 to vector<128x128xf32>
    %60 = arith.select %57, %58, %59 : vector<128x128xi1>, vector<128x128xf32>
    %61 = arith.truncf %60 : vector<128x128xf32> to vector<128x128xbf16>
    %cst_31 = arith.constant dense<0.000000e+00> : vector<128x8xf32>
    %62 = tpu.matmul %61, %46, %cst_31 {dimension_numbers = #tpu.dot_dimension_numbers<[1], [0], [0], [1], [0, 0, 1, 1], [], []>} : vector<128x128xbf16>, vector<128x8xbf16>, vector<128x8xf32> -> vector<128x8xf32>
    %63 = arith.addf %34, %49 : vector<128x1xf32>
    %cst_32 = arith.constant 0.000000e+00 : f32
    %64 = vector.broadcast %cst_32 : f32 to vector<128x1xf32>
    %65 = arith.maximumf %63, %64 : vector<128x1xf32>
    %cst_33 = arith.constant -1.000000e+01 : f32
    %66 = vector.broadcast %cst_33 : f32 to vector<128x1xf32>
    %67 = arith.mulf %66, %65 : vector<128x1xf32>
    %68 = math.exp %67 : vector<128x1xf32>
    %69 = vector.broadcast %68 : vector<128x1xf32> to vector<128x8xf32>
    %70 = arith.mulf %69, %62 : vector<128x8xf32>
    %cst_34 = arith.constant 0x7F800000 : f32
    %71 = vector.broadcast %cst_34 : f32 to vector<128x1xf32>
    %72 = arith.cmpf olt, %49, %71 : vector<128x1xf32>
    %73 = arith.addf %18, %70 : vector<128x8xf32>
    %74 = arith.maximumf %18, %70 : vector<128x8xf32>
    %75 = vector.shape_cast %72 : vector<128x1xi1> to vector<128x1xi1>
    %76 = vector.broadcast %75 : vector<128x1xi1> to vector<128x8xi1>
    %77 = arith.select %76, %74, %18 : vector<128x8xi1>, vector<128x8xf32>
    %78 = arith.extui %72 : vector<128x1xi1> to vector<128x1xi32>
    %79 = arith.sitofp %78 : vector<128x1xi32> to vector<128x1xf32>
    %80 = arith.addf %47, %79 : vector<128x1xf32>
    %cst_35 = arith.constant 1.000000e+00 : f32
    %81 = vector.broadcast %cst_35 : f32 to vector<128x1xf32>
    %82 = arith.divf %81, %80 : vector<128x1xf32>
    %83 = vector.broadcast %82 : vector<128x1xf32> to vector<128x8xf32>
    %84 = arith.mulf %73, %83 : vector<128x8xf32>
    %85 = tpu.concatenate %11, %84, %77 in 1 : vector<128x23xf32>, vector<128x8xf32>, vector<128x8xf32> -> vector<128x39xf32>
    %cst_36 = arith.constant dense<0.000000e+00> : vector<128x23xf32>
    %86 = tpu.matmul %85, %30, %cst_36 {dimension_numbers = #tpu.dot_dimension_numbers<[1], [0], [0], [1], [0, 0, 1, 1], [], []>} : vector<128x39xf32>, vector<39x23xf32>, vector<128x23xf32> -> vector<128x23xf32>
    %87 = vector.broadcast %31 : vector<1x23xf32> to vector<128x23xf32>
    %88 = arith.addf %86, %87 : vector<128x23xf32>
    %c0_37 = arith.constant 0 : index
    %c0_38 = arith.constant 0 : index
    %89 = vector.load %arg10[%c0_37, %c0_38] : memref<128x23xf32, #tpu.memory_space<vmem>>, vector<128x23xf32>
    tpu.vector_store %arg10[%c0_37, %c0_38], %88 {strides = array<i32>} : memref<128x23xf32, #tpu.memory_space<vmem>>, vector<128x23xf32>,
    %c0_39 = arith.constant 0 : index
    %c0_40 = arith.constant 0 : index
    %90 = vector.load %arg8[%c0_39, %c0_40] : memref<23x16xf32, #tpu.memory_space<vmem>>, vector<23x16xf32>
    %cst_41 = arith.constant dense<0.000000e+00> : vector<128x16xf32>
    %91 = tpu.matmul %88, %90, %cst_41 {dimension_numbers = #tpu.dot_dimension_numbers<[1], [0], [0], [1], [0, 0, 1, 1], [], []>} : vector<128x23xf32>, vector<23x16xf32>, vector<128x16xf32> -> vector<128x16xf32>
    %c0_42 = arith.constant 0 : index
    %c0_43 = arith.constant 0 : index
    %92 = vector.load %arg9[%c0_42, %c0_43] : memref<1x16xf32, #tpu.memory_space<vmem>>, vector<1x16xf32>
    %93 = vector.broadcast %92 : vector<1x16xf32> to vector<128x16xf32>
    %94 = arith.addf %91, %93 : vector<128x16xf32>
    %c0_44 = arith.constant 0 : index
    %c0_45 = arith.constant 0 : index
    %95 = vector.load %arg11[%c0_44, %c0_45] : memref<128x16xf32, #tpu.memory_space<vmem>>, vector<128x16xf32>
    tpu.vector_store %arg11[%c0_44, %c0_45], %94 {strides = array<i32>} : memref<128x16xf32, #tpu.memory_space<vmem>>, vector<128x16xf32>,
    return
  }
  func.func @transform_0(%arg0: i32) -> (i32, i32) {
    %c0_i32 = arith.constant 0 : i32
    %c0_i32_0 = arith.constant 0 : i32
    %c0_i32_1 = arith.constant 0 : i32
    return %c0_i32, %c0_i32_0 : i32, i32
  }
  func.func @transform_1(%arg0: i32) -> (i32, i32) {
    %c0_i32 = arith.constant 0 : i32
    %c0_i32_0 = arith.constant 0 : i32
    return %arg0, %c0_i32 : i32, i32
  }
  func.func @transform_2(%arg0: i32) -> (i32, i32) {
    %c0_i32 = arith.constant 0 : i32
    %c0_i32_0 = arith.constant 0 : i32
    %c0_i32_1 = arith.constant 0 : i32
    return %c0_i32, %c0_i32_0 : i32, i32
  }
  func.func @transform_3(%arg0: i32) -> (i32, i32) {
    %c0_i32 = arith.constant 0 : i32
    %c0_i32_0 = arith.constant 0 : i32
    %c0_i32_1 = arith.constant 0 : i32
    return %c0_i32, %c0_i32_0 : i32, i32
  }
  func.func @transform_4(%arg0: i32) -> (i32, i32) {
    %c0_i32 = arith.constant 0 : i32
    %c0_i32_0 = arith.constant 0 : i32
    %c0_i32_1 = arith.constant 0 : i32
    return %c0_i32, %c0_i32_0 : i32, i32
  }
  func.func @transform_5(%arg0: i32) -> (i32, i32) {
    %c0_i32 = arith.constant 0 : i32
    %c0_i32_0 = arith.constant 0 : i32
    %c0_i32_1 = arith.constant 0 : i32
    return %c0_i32, %c0_i32_0 : i32, i32
  }
  func.func @transform_6(%arg0: i32) -> (i32, i32) {
    %c0_i32 = arith.constant 0 : i32
    %c0_i32_0 = arith.constant 0 : i32
    %c0_i32_1 = arith.constant 0 : i32
    return %c0_i32, %c0_i32_0 : i32, i32
  }
  func.func @transform_7(%arg0: i32) -> (i32, i32) {
    %c0_i32 = arith.constant 0 : i32
    %c0_i32_0 = arith.constant 0 : i32
    %c0_i32_1 = arith.constant 0 : i32
    return %c0_i32, %c0_i32_0 : i32, i32
  }
  func.func @transform_8(%arg0: i32) -> (i32, i32) {
    %c0_i32 = arith.constant 0 : i32
    %c0_i32_0 = arith.constant 0 : i32
    %c0_i32_1 = arith.constant 0 : i32
    return %c0_i32, %c0_i32_0 : i32, i32
  }
  func.func @transform_9(%arg0: i32) -> (i32, i32) {
    %c0_i32 = arith.constant 0 : i32
    %c0_i32_0 = arith.constant 0 : i32
    return %arg0, %c0_i32 : i32, i32
  }
  func.func @transform_10(%arg0: i32) -> (i32, i32) {
    %c0_i32 = arith.constant 0 : i32
    %c0_i32_0 = arith.constant 0 : i32
    return %arg0, %c0_i32 : i32, i32
  }
}

</mosaic_0001>

<bundles_post_ra>
// kernel: tpu_custom_call.1
= control target key start
LH: loop header
LB: loop body
LE: loop exit
PB: predicated region body
PF: predicated region fallthrough
CT: control target
= control target key end

     0   :  { %vm111_vm0 = vcmask 1046528   ;;  %vm62_vm1 = vcmask 187392   ;;  %v3186_v2 = vmov 0   ;;  %v4693_v36 = vmov 0.0   ;;  %s3193_s28 = smov 23   ;;  %s3194_s11 = smov 15   ;;  %s4682_s3 = inlined_call_operand.vmem [shape: f32[23,16], index: 3, kind: input, shape index: {}]   ;;  %s4683_s0 = inlined_call_operand.vmem [shape: f32[128,23], index: 0, kind: input, shape index: {}]   ;;  %s4684_s1 = inlined_call_operand.vmem [shape: s32[128,1], index: 1, kind: input, shape index: {}]   ;;  %s4685_s4 = inlined_call_operand.vmem [shape: f32[1,16], index: 4, kind: input, shape index: {}]   ;;  %s4686_s2 = inlined_call_operand.vmem [shape: s32[1,128], index: 2, kind: input, shape index: {}]   ;;  %s4687_s5 = inlined_call_operand.vmem [shape: f32[39,23], index: 5, kind: input, shape index: {}]   ;;  %s4688_s7 = inlined_call_operand.vmem [shape: f32[23,16], index: 7, kind: input, shape index: {}]   ;;  %s4689_s6 = inlined_call_operand.vmem [shape: f32[1,23], index: 6, kind: input, shape index: {}]   ;;  %s4690_s9 = inlined_call_operand.vmem [shape: f32[128,23], index: 9, kind: output, shape index: {0}]   ;;  %s4691_s8 = inlined_call_operand.vmem [shape: f32[1,16], index: 8, kind: input, shape index: {}]   ;;  %s4692_s10 = inlined_call_operand.vmem [shape: f32[128,16], index: 10, kind: output, shape index: {1}]  }
   0x1   :  { %v54_v0 = vld [vmem:[%s4682_s3 + $0x10] sm:$0x7f]  ;;  %v53_v1 = vld [vmem:[%s4682_s3 + $0x8] sm:$0xff]  ;;  %3105 = vset.pattern.permute.xlu1 %v3186_v2  ;;  %3104 = vset.pattern.permute.xlu0 %v3186_v2  ;;  %v36_v3 = vld [vmem:[%s4683_s0] sm:$0xff]  ;;  %vm3188_vm2 = vmmov 0   ;;  %vm645_vm3 = vcmask 64512  }
   0x2   :  { %2832 = vmatprep.subr.msk.mxu0 %vm111_vm0, %v54_v0  ;;  %2862 = vmatprep.subr.msk.mxu1 %vm111_vm0, %v54_v0  ;;  %v52_v4 = vld [vmem:[%s4682_s3] sm:$0xff]  ;;  %v37_v5 = vld [vmem:[%s4683_s0 + $0x8] sm:$0xff]  ;;  %v38_v6 = vld [vmem:[%s4683_s0 + $0x10] sm:$0xff] }
   0x3   :  { %2833 = vmatpush3.msk.msra.mxu0 %vm111_vm0, %v54_v0  ;;  %2838 = vmatprep.mubr.msk.f32.mxu0 %vm62_vm1, %v36_v3  ;;  %v508_v7 = vld [vmem:[%s4684_s1 + $0x10] sm:$0xff]  ;;  %v506_v8 = vld [vmem:[%s4684_s1] sm:$0xff]  ;;  %v39_v9 = vld [vmem:[%s4683_s0 + $0x18] sm:$0xff] }
   0x4   :  { %2834 = vmatprep.subr.mxu0 %v53_v1  ;;  %2863 = vmatpush3.msk.msra.mxu1 %vm111_vm0, %v54_v0  ;;  %v40_v10 = vld [vmem:[%s4683_s0 + $0x20] sm:$0xff]  ;;  %v509_v11 = vld [vmem:[%s4684_s1 + $0x18] sm:$0xff]  ;;  %v507_v12 = vld [vmem:[%s4684_s1 + $0x8] sm:$0xff] }
   0x5   :  { %2835 = vmatpush3.msra.mxu0 %v53_v1  ;;  %2864 = vmatprep.subr.mxu1 %v53_v1  ;;  %v41_v13 = vld [vmem:[%s4683_s0 + $0x28] sm:$0xff]  ;;  %v42_v14 = vld [vmem:[%s4683_s0 + $0x30] sm:$0xff]  ;;  %v510_v16 = vld [vmem:[%s4684_s1 + $0x20] sm:$0xff] }
   0x6   :  { %2836 = vmatprep.subr.mxu0 %v52_v4  ;;  %2865 = vmatpush3.msra.mxu1 %v53_v1  ;;  %v511_v15 = vld [vmem:[%s4684_s1 + $0x28] sm:$0xff]  ;;  %v43_v17 = vld [vmem:[%s4683_s0 + $0x38] sm:$0xff]  ;;  %v44_v18 = vld [vmem:[%s4683_s0 + $0x40] sm:$0xff] }
   0x7   :  { %2837 = vmatpush3.msra.mxu0 %v52_v4  ;;  %2866 = vmatprep.subr.mxu1 %v52_v4  ;;  %v513_v19 = vld [vmem:[%s4684_s1 + $0x38] sm:$0xff]  ;;  %v45_v20 = vld [vmem:[%s4683_s0 + $0x48] sm:$0xff]  ;;  %v46_v21 = vld [vmem:[%s4683_s0 + $0x50] sm:$0xff] }
   0x8   :  { %2839 = vmatmul.mubr.msk.f32.vlgmr.msra.gmra.mxu0 %vm62_vm1, %v37_v5  ;;  %2867 = vmatpush3.msra.mxu1 %v52_v4  ;;  %v515_v22 = vld [vmem:[%s4684_s1 + $0x48] sm:$0xff]  ;;  %v47_v23 = vld [vmem:[%s4683_s0 + $0x58] sm:$0xff]  ;;  %v48_v24 = vld [vmem:[%s4683_s0 + $0x60] sm:$0xff] }
   0x9   :  { %2841 = vmatprep.mubr.msk.f32.mxu0 %vm62_vm1, %v38_v6  ;;  %2868 = vmatprep.mubr.msk.f32.mxu1 %vm62_vm1, %v36_v3  ;;  %v49_v25 = vld [vmem:[%s4683_s0 + $0x68] sm:$0xff]  ;;  %v50_v26 = vld [vmem:[%s4683_s0 + $0x70] sm:$0xff]  ;;  %v51_v27 = vld [vmem:[%s4683_s0 + $0x78] sm:$0xff] }
   0xa   :  { %2869 = vmatmul.mubr.msk.f32.vlgmr.msra.gmra.mxu1 %vm62_vm1, %v37_v5  ;;  %530 = vperm.xlu1 %3105, %v508_v7   ;;  %v517_v28 = vld [vmem:[%s4684_s1 + $0x58] sm:$0xff]  ;;  %v512_v29 = vld [vmem:[%s4684_s1 + $0x30] sm:$0xff]  ;;  %v519_v30 = vld [vmem:[%s4684_s1 + $0x68] sm:$0xff] }
   0xb   :  { %2871 = vmatprep.mubr.msk.f32.mxu1 %vm62_vm1, %v38_v6  ;;  %524 = vperm.xlu0 %3104, %v506_v8   ;;  %v514_v31 = vld [vmem:[%s4684_s1 + $0x40] sm:$0xff]  ;;  %v521_v32 = vld [vmem:[%s4684_s1 + $0x78] sm:$0xff]  ;;  %v516_v33 = vld [vmem:[%s4684_s1 + $0x50] sm:$0xff] }
   0xc   :  { %2842 = vmatmul.mubr.msk.f32.gmra.mxu0 %vm62_vm1, %v39_v9  ;;  %v518_v34 = vld [vmem:[%s4684_s1 + $0x60] sm:$0xff]  ;;  %v520_v35 = vld [vmem:[%s4684_s1 + $0x70] sm:$0xff]  ;;  %2892 = vmatprep.subr.mxu0 %v4693_v36  ;;  %s3189_s1 = smov 120  }
   0xd   :  { %2844 = vmatprep.mubr.msk.f32.mxu0 %vm62_vm1, %v40_v10  ;;  %v3396_v37 = vld [vmem:[%s4685_s4] ss:$0 sm:$0xff] }
   0xe   :  { %2872 = vmatmul.mubr.msk.f32.gmra.mxu1 %vm62_vm1, %v39_v9  ;;  %533 = vperm.xlu1 %3105, %v509_v11  }
   0xf   :  { %2874 = vmatprep.mubr.msk.f32.mxu1 %vm62_vm1, %v40_v10  ;;  %527 = vperm.xlu0 %3104, %v507_v12  }
  0x10   :  { %2845 = vmatmul.mubr.msk.f32.gmra.mxu0 %vm62_vm1, %v41_v13 }
  0x11   :  { %2847 = vmatprep.mubr.msk.f32.mxu0 %vm62_vm1, %v42_v14 }
  0x12   :  { %2875 = vmatmul.mubr.msk.f32.gmra.mxu1 %vm62_vm1, %v41_v13  ;;  %539 = vperm.xlu1 %3105, %v511_v15  }
  0x13   :  { %2877 = vmatprep.mubr.msk.f32.mxu1 %vm62_vm1, %v42_v14  ;;  %536 = vperm.xlu0 %3104, %v510_v16  }
  0x14   :  { %2848 = vmatmul.mubr.msk.f32.gmra.mxu0 %vm62_vm1, %v43_v17 }
  0x15   :  { %2850 = vmatprep.mubr.msk.f32.mxu0 %vm62_vm1, %v44_v18 }
  0x16   :  { %2878 = vmatmul.mubr.msk.f32.gmra.mxu1 %vm62_vm1, %v43_v17  ;;  %545 = vperm.xlu1 %3105, %v513_v19  }
  0x17   :  { %2880 = vmatprep.mubr.msk.f32.mxu1 %vm62_vm1, %v44_v18  ;;  %542 = vperm.xlu0 %3104, %v512_v29  }
  0x18   :  { %2851 = vmatmul.mubr.msk.f32.gmra.mxu0 %vm62_vm1, %v45_v20 }
  0x19   :  { %2853 = vmatprep.mubr.msk.f32.mxu0 %vm62_vm1, %v46_v21 }
  0x1a   :  { %2881 = vmatmul.mubr.msk.f32.gmra.mxu1 %vm62_vm1, %v45_v20  ;;  %551 = vperm.xlu1 %3105, %v515_v22  }
  0x1b   :  { %2883 = vmatprep.mubr.msk.f32.mxu1 %vm62_vm1, %v46_v21  ;;  %548 = vperm.xlu0 %3104, %v514_v31  }
  0x1c   :  { %2854 = vmatmul.mubr.msk.f32.gmra.mxu0 %vm62_vm1, %v47_v23 }
  0x1d   :  { %2856 = vmatprep.mubr.msk.f32.mxu0 %vm62_vm1, %v48_v24 }
  0x1e   :  { %2884 = vmatmul.mubr.msk.f32.gmra.mxu1 %vm62_vm1, %v47_v23  ;;  %557 = vperm.xlu1 %3105, %v517_v28  }
  0x1f   :  { %2886 = vmatprep.mubr.msk.f32.mxu1 %vm62_vm1, %v48_v24  ;;  %554 = vperm.xlu0 %3104, %v516_v33  }
  0x20   :  { %2857 = vmatmul.mubr.msk.f32.gmra.mxu0 %vm62_vm1, %v49_v25 }
  0x21   :  { %2859 = vmatprep.mubr.msk.f32.mxu0 %vm62_vm1, %v50_v26 }
  0x22   :  { %2887 = vmatmul.mubr.msk.f32.gmra.mxu1 %vm62_vm1, %v49_v25  ;;  %563 = vperm.xlu1 %3105, %v519_v30  }
  0x23   :  { %2889 = vmatprep.mubr.msk.f32.mxu1 %vm62_vm1, %v50_v26  ;;  %560 = vperm.xlu0 %3104, %v518_v34  }
  0x24   :  { %2860 = vmatmul.mubr.msk.f32.gmra.mxu0 %vm62_vm1, %v51_v27 }
  0x25   :  { %2924 = vmatprep.mubr.msk.f32.mxu0 %vm3188_vm2, %v4693_v36 }
  0x26   :  { %2890 = vmatmul.mubr.msk.f32.gmra.mxu1 %vm62_vm1, %v51_v27  ;;  %569 = vperm.xlu1 %3105, %v521_v32  }
  0x27   :  { %566 = vperm.xlu0 %3104, %v520_v35  }
  0xc8   :  { %v2840_v38 = vpop.f32.mrf.mxu0 }
  0xc9   :  { %v3399_v39 = vadd.f32 %v2840_v38, %v3396_v37 }
  0xca   :  { %v181_v40 = vpop.f32.mrf.mxu0  ;;  %v2870_v41 = vpop.f32.mrf.mxu1 }
  0xcb   :  { %v3402_v42 = vadd.f32 %v3396_v37, %v181_v40  ;;  %v3405_v43 = vadd.f32 %v2870_v41, %v3396_v37  ;;  %v695_v40 = vmul.f32 %v3399_v39, %v3399_v39 }
  0xcc   :  { %v2843_v44 = vpop.f32.mrf.mxu0  ;;  %v391_v45 = vpop.f32.mrf.mxu1 }
  0xcd   :  { %v3408_v46 = vadd.f32 %v2843_v44, %v3396_v37  ;;  %v3411_v47 = vadd.f32 %v3396_v37, %v391_v45  ;;  %v3536_v44 = vpop.permute.xlu1 %530  ;;  %v694_v45 = vmul.f32 %v3402_v42, %v3402_v42 }
  0xce   :  { %v191_v48 = vpop.f32.mrf.mxu0  ;;  %v2873_v24 = vpop.f32.mrf.mxu1 }
  0xcf   :  { %v3414_v49 = vadd.f32 %v3396_v37, %v191_v48  ;;  %2959 = vmatprep.mubr.msk.f32.mxu1 %vm645_vm3, %v3411_v47  ;;  %v697_v33 = vmul.f32 %v3408_v46, %v3408_v46 }
  0xd0   :  { %v2846_v50 = vpop.f32.mrf.mxu0  ;;  %v401_v26 = vpop.f32.mrf.mxu1 }
  0xd1   :  { %v3419_v52 = vadd.f32 %v2846_v50, %v3396_v37  ;;  %v696_v35 = vmul.f32 %v3414_v49, %v3414_v49  ;;  %v3543_v48 = vadd.f32 %v3396_v37, %v401_v26 }
  0xd2   :  { %v201_v51 = vpop.f32.mrf.mxu0  ;;  %v2876_v28 = vpop.f32.mrf.mxu1 }
  0xd3   :  { %v3422_v53 = vadd.f32 %v3396_v37, %v201_v51  ;;  %v699_v29 = vmul.f32 %v3419_v52, %v3419_v52  ;;  %v3547_v51 = vadd.f32 %v2873_v24, %v3396_v37 }
  0xd4   :  { %v2849_v54 = vpop.f32.mrf.mxu0  ;;  %v411_v30 = vpop.f32.mrf.mxu1 }
  0xd5   :  { %v1126_v55 = vpack.c.bf16 %v3419_v52, %v3422_v53  ;;  %v3427_v57 = vadd.f32 %v2849_v54, %v3396_v37  ;;  %v698_v31 = vmul.f32 %v3422_v53, %v3422_v53  ;;  %v3190_v54 = vmov 1.0  }
  0xd6   :  { %v211_v56 = vpop.f32.mrf.mxu0  ;;  %v2879_v32 = vpop.f32.mrf.mxu1 }
  0xd7   :  { %v3430_v58 = vadd.f32 %v3396_v37, %v211_v56  ;;  %v701_v25 = vmul.f32 %v3427_v57, %v3427_v57  ;;  %v3555_v56 = vadd.f32 %v3396_v37, %v411_v30  ;;  %v470_v30 = vlaneseq }
  0xd8   :  { %v2852_v59 = vpop.f32.mrf.mxu0  ;;  %v421_v34 = vpop.f32.mrf.mxu1 }
  0xd9   :  { %v1127_v60 = vpack.c.bf16 %v3427_v57, %v3430_v58  ;;  %v227_v62 = vadd.f32 %v2852_v59, %v3396_v37  ;;  %v700_v27 = vmul.f32 %v3430_v58, %v3430_v58  ;;  %v3557_v59 = vpop.permute.xlu1 %533 }
  0xda   :  { %v221_v61 = vpop.f32.mrf.mxu0  ;;  %v2882_v38 = vpop.f32.mrf.mxu1 }
  0xdb   :  { %v222_v63 = vadd.f32 %v3396_v37, %v221_v61  ;;  %v703_v22 = vmul.f32 %v227_v62, %v227_v62 }
  0xdc   :  { %v2855_v0 = vpop.f32.mrf.mxu0  ;;  %v431_v41 = vpop.f32.mrf.mxu1 }
  0xdd   :  { %v1128_v1 = vpack.c.bf16 %v227_v62, %v222_v63  ;;  %v237_v3 = vadd.f32 %v2855_v0, %v3396_v37  ;;  %v702_v23 = vmul.f32 %v222_v63, %v222_v63 }
  0xde   :  { %v231_v2 = vpop.f32.mrf.mxu0  ;;  %v2885_v50 = vpop.f32.mrf.mxu1 }
  0xdf   :  { %v232_v4 = vadd.f32 %v3396_v37, %v231_v2  ;;  %1476 = vrot.lane.b32.xlu1 %v1128_v1, %s3189_s1  ;;  %v705_v20 = vmul.f32 %v237_v3, %v237_v3  ;;  %v3569_v1 = vpop.permute.xlu1 %539  ;;  %v3572_v2 = vadd.f32 %v2879_v32, %v3396_v37  ;;  %v3648_v32 = vand.u32 127, %v470_v30 }
  0xe0   :  { %v2858_v5 = vpop.f32.mrf.mxu0  ;;  %v441_v61 = vpop.f32.mrf.mxu1 }
  0xe1   :  { %v1129_v6 = vpack.c.bf16 %v237_v3, %v232_v4  ;;  %v247_v8 = vadd.f32 %v2858_v5, %v3396_v37  ;;  %v704_v21 = vmul.f32 %v232_v4, %v232_v4 }
  0xe2   :  { %v241_v7 = vpop.f32.mrf.mxu0  ;;  %v2888_v0 = vpop.f32.mrf.mxu1 }
  0xe3   :  { %v242_v9 = vadd.f32 %v3396_v37, %v241_v7  ;;  %1478 = vrot.lane.b32.xlu1 %v1129_v6, %s3189_s1  ;;  %v707_v18 = vmul.f32 %v247_v8, %v247_v8  ;;  %v3584_v6 = vadd.f32 %v2882_v38, %v3396_v37  ;;  %v3591_v7 = vadd.f32 %v3396_v37, %v441_v61 }
  0xe4   :  { %v2861_v10 = vpop.f32.mrf.mxu0  ;;  %v451_v5 = vpop.f32.mrf.mxu1 }
  0xe5   :  { %v257_v11 = vadd.f32 %v2861_v10, %v3396_v37  ;;  %v1130_v12 = vpack.c.bf16 %v247_v8, %v242_v9  ;;  %v706_v19 = vmul.f32 %v242_v9, %v242_v9 }
  0xe6   :  { %v251_v13 = vpop.f32.mrf.mxu0  ;;  %v2891_v10 = vpop.f32.mrf.mxu1 }
  0xe7   :  { %v709_v14 = vmul.f32 %v257_v11, %v257_v11  ;;  %v252_v15 = vadd.f32 %v3396_v37, %v251_v13  ;;  %2927 = vmatprep.subr.msk.mxu1 %vm645_vm3, %v257_v11  ;;  %1480 = vrot.lane.b32.xlu0 %v1130_v12, %s3189_s1  ;;  %v3605_v12 = vadd.f32 %v3396_v37, %v451_v5 }
  0xe8   :  { %2928 = vmatpush3.xpose.msk.msra.mxu1 %vm645_vm3, %v257_v11  ;;  %v461_v13 = vpop.f32.mrf.mxu1 }
  0xe9   :  { %2893 = vmatpush3.xpose.msk.msra.mxu0 %vm645_vm3, %v709_v14  ;;  %2929 = vmatprep.subr.msk.mxu1 %vm645_vm3, %v252_v15  ;;  %v1131_v16 = vpack.c.bf16 %v257_v11, %v252_v15  ;;  %v708_v17 = vmul.f32 %v252_v15, %v252_v15  ;;  %v3598_v11 = vadd.f32 %v2885_v50, %v3396_v37 }
  0xea   :  { %2894 = vmatprep.subr.mxu0 %v4693_v36  ;;  %v3608_v14 = vadd.f32 %v2888_v0, %v3396_v37 }
  0xeb   :  { %1482 = vrot.lane.b32.xlu1 %v1131_v16, %s3189_s1 }
  0xec   :  { %2930 = vmatpush3.xpose.msk.msra.mxu1 %vm645_vm3, %v252_v15 }
  0xed   :  { %2895 = vmatpush3.xpose.msk.msra.mxu0 %vm645_vm3, %v708_v17  ;;  %2931 = vmatprep.subr.msk.mxu1 %vm645_vm3, %v247_v8  ;;  %v3619_v17 = vadd.f32 %v3396_v37, %v461_v13 }
  0xee   :  { %2896 = vmatprep.subr.mxu0 %v4693_v36 }
  0xf0   :  { %2932 = vmatpush3.xpose.msk.msra.mxu1 %vm645_vm3, %v247_v8  ;;  %v3593_v8 = vpop.permute.xlu1 %545 }
  0xf1   :  { %2897 = vmatpush3.xpose.msk.msra.mxu0 %vm645_vm3, %v707_v18  ;;  %2933 = vmatprep.subr.msk.mxu1 %vm645_vm3, %v242_v9  ;;  %v3622_v18 = vadd.f32 %v2891_v10, %v3396_v37 }
  0xf2   :  { %2898 = vmatprep.subr.mxu0 %v4693_v36 }
  0xf4   :  { %2934 = vmatpush3.xpose.msk.msra.mxu1 %vm645_vm3, %v242_v9  ;;  %v3612_v15 = vpop.permute.xlu1 %551 }
  0xf5   :  { %2899 = vmatpush3.xpose.msk.msra.mxu0 %vm645_vm3, %v706_v19  ;;  %2935 = vmatprep.subr.msk.mxu1 %vm645_vm3, %v237_v3 }
  0xf6   :  { %2900 = vmatprep.subr.mxu0 %v4693_v36 }
  0xf8   :  { %2936 = vmatpush3.xpose.msk.msra.mxu1 %vm645_vm3, %v237_v3  ;;  %v3576_v3 = vpop.permute.xlu0 %524  ;;  %v3628_v19 = vpop.permute.xlu1 %557 }
  0xf9   :  { %2901 = vmatpush3.xpose.msk.msra.mxu0 %vm645_vm3, %v705_v20  ;;  %2937 = vmatprep.subr.msk.mxu1 %vm645_vm3, %v232_v4 }
  0xfa   :  { %2902 = vmatprep.subr.mxu0 %v4693_v36 }
  0xfc   :  { %2938 = vmatpush3.xpose.msk.msra.mxu1 %vm645_vm3, %v232_v4  ;;  %v3581_v4 = vadd.f32 %v3396_v37, %v431_v41  ;;  %v3595_v9 = vpop.permute.xlu0 %527 }
  0xfd   :  { %2903 = vmatpush3.xpose.msk.msra.mxu0 %vm645_vm3, %v704_v21  ;;  %2939 = vmatprep.subr.msk.mxu1 %vm645_vm3, %v227_v62  ;;  %v3634_v21 = vpop.permute.xlu1 %563 }
  0xfe   :  { %2904 = vmatprep.subr.mxu0 %v4693_v36 }
 0x100   :  { %2940 = vmatpush3.xpose.msk.msra.mxu1 %vm645_vm3, %v227_v62  ;;  %v3560_v62 = vadd.f32 %v2876_v28, %v3396_v37  ;;  %v3614_v16 = vpop.permute.xlu0 %536 }
 0x101   :  { %2905 = vmatpush3.xpose.msk.msra.mxu0 %vm645_vm3, %v703_v22  ;;  %2941 = vmatprep.subr.msk.mxu1 %vm645_vm3, %v222_v63 }
 0x102   :  { %2906 = vmatprep.subr.mxu0 %v4693_v36 }
 0x104   :  { %2942 = vmatpush3.xpose.msk.msra.mxu1 %vm645_vm3, %v222_v63  ;;  %v3567_v63 = vadd.f32 %v3396_v37, %v421_v34  ;;  %v3630_v20 = vpop.permute.xlu0 %542 }
 0x105   :  { %2907 = vmatpush3.xpose.msk.msra.mxu0 %vm645_vm3, %v702_v23  ;;  %2943 = vmatprep.subr.msk.mxu1 %vm645_vm3, %v3427_v57  ;;  %v3638_v23 = vpop.permute.xlu1 %569 }
 0x106   :  { %2908 = vmatprep.subr.mxu0 %v4693_v36 }
 0x108   :  { %2944 = vmatpush3.xpose.msk.msra.mxu1 %vm645_vm3, %v3427_v57  ;;  %v3636_v22 = vpop.permute.xlu0 %548 }
 0x109   :  { %2909 = vmatpush3.xpose.msk.msra.mxu0 %vm645_vm3, %v701_v25  ;;  %2945 = vmatprep.subr.msk.mxu1 %vm645_vm3, %v3430_v58 }
 0x10a   :  { %2910 = vmatprep.subr.mxu0 %v4693_v36 }
 0x10c   :  { %2946 = vmatpush3.xpose.msk.msra.mxu1 %vm645_vm3, %v3430_v58  ;;  %v3640_v37 = vpop.permute.xlu0 %554 }
 0x10d   :  { %2911 = vmatpush3.xpose.msk.msra.mxu0 %vm645_vm3, %v700_v27  ;;  %2947 = vmatprep.subr.msk.mxu1 %vm645_vm3, %v3419_v52 }
 0x10e   :  { %2912 = vmatprep.subr.mxu0 %v4693_v36 }
 0x110   :  { %2948 = vmatpush3.xpose.msk.msra.mxu1 %vm645_vm3, %v3419_v52  ;;  %v3642_v24 = vpop.permute.xlu0 %560 }
 0x111   :  { %2913 = vmatpush3.xpose.msk.msra.mxu0 %vm645_vm3, %v699_v29  ;;  %2949 = vmatprep.subr.msk.mxu1 %vm645_vm3, %v3422_v53 }
 0x112   :  { %2914 = vmatprep.subr.mxu0 %v4693_v36 }
 0x114   :  { %2950 = vmatpush3.xpose.msk.msra.mxu1 %vm645_vm3, %v3422_v53  ;;  %v3644_v26 = vpop.permute.xlu0 %566 }
 0x115   :  { %2915 = vmatpush3.xpose.msk.msra.mxu0 %vm645_vm3, %v698_v31  ;;  %2951 = vmatprep.subr.msk.mxu1 %vm645_vm3, %v3408_v46  ;;  %v3646_v31 = vshrl.u32 %v470_v30, 7 }
 0x116   :  { %2916 = vmatprep.subr.mxu0 %v4693_v36 }
 0x117   :  { %v474_v34 = vadd.s32 8, %v3646_v31  ;;  %vm591_vm7 = vcmp.ne.s32.totalorder %v3648_v32, %v3646_v31 }
 0x118   :  { %2952 = vmatpush3.xpose.msk.msra.mxu1 %vm645_vm3, %v3408_v46 }
 0x119   :  { %2917 = vmatpush3.xpose.msk.msra.mxu0 %vm645_vm3, %v697_v33  ;;  %2953 = vmatprep.subr.msk.mxu1 %vm645_vm3, %v3414_v49  ;;  %v1090_v33 = vsub.s32 0, %v3646_v31  ;;  %vm592_vm5 = vcmp.ne.s32.totalorder %v3648_v32, %v474_v34 }
 0x11a   :  { %2918 = vmatprep.subr.mxu0 %v4693_v36 }
 0x11c   :  { %2954 = vmatpush3.xpose.msk.msra.mxu1 %vm645_vm3, %v3414_v49 }
 0x11d   :  { %2919 = vmatpush3.xpose.msk.msra.mxu0 %vm645_vm3, %v696_v35  ;;  %2955 = vmatprep.subr.msk.mxu1 %vm645_vm3, %v3399_v39  ;;  %v3655_v35 = vld [vmem:[%s4686_s2] ss:$0 sm:$0xff]  ;;  %s3192_s2 = smov 8  }
 0x11e   :  { %2920 = vmatprep.subr.mxu0 %v4693_v36  ;;  %vm576_vm4 = vcmp.eq.s32.totalorder %v3595_v9, %v3655_v35  ;;  %vm575_vm6 = vcmp.eq.s32.totalorder %v3576_v3, %v3655_v35  ;;  %vm578_vm8 = vcmp.eq.s32.totalorder %v3557_v59, %v3655_v35  ;;  %vm577_vm13 = vcmp.eq.s32.totalorder %v3536_v44, %v3655_v35 }
 0x11f   :  { %vm608_vm9 = vmand %vm576_vm4, %vm592_vm5  ;;  %vm579_vm15 = vcmp.eq.s32.totalorder %v3614_v16, %v3655_v35  ;;  %vm580_vm4 = vcmp.eq.s32.totalorder %v3569_v1, %v3655_v35 }
 0x120   :  { %2956 = vmatpush3.xpose.msk.msra.mxu1 %vm645_vm3, %v3399_v39  ;;  %vm607_vm11 = vmand %vm575_vm6, %vm591_vm7  ;;  %vm581_vm7 = vcmp.eq.s32.totalorder %v3630_v20, %v3655_v35  ;;  %v484_v20 = vadd.s32 88, %v3646_v31 }
 0x121   :  { %2921 = vmatpush3.xpose.msk.msra.mxu0 %vm645_vm3, %v695_v40  ;;  %2957 = vmatprep.subr.msk.mxu1 %vm645_vm3, %v3402_v42 }
 0x122   :  { %2922 = vmatprep.subr.mxu0 %v4693_v36 }
 0x124   :  { %2958 = vmatpush3.xpose.msk.msra.mxu1 %vm645_vm3, %v3402_v42 }
 0x125   :  { %2923 = vmatpush3.xpose.msk.msra.mxu0 %vm645_vm3, %v694_v45  ;;  %v476_v45 = vadd.s32 24, %v3646_v31 }
 0x127   :  { %2960 = vmatmul.mubr.msk.f32.vlgmr.msra.gmra.mxu1 %vm645_vm3, %v3405_v43  ;;  %vm594_vm10 = vcmp.ne.s32.totalorder %v3648_v32, %v476_v45  ;;  %v479_v45 = vadd.s32 48, %v3646_v31 }
 0x128   :  { %2925 = vmatmul.mubr.msk.f32.vlgmr.msra.gmra.mxu0 %vm645_vm3, %v3190_v54  ;;  %2962 = vmatprep.mubr.msk.f32.mxu1 %vm645_vm3, %v3543_v48  ;;  %vm610_vm12 = vmand %vm578_vm8, %vm594_vm10 }
 0x12b   :  { %2963 = vmatmul.mubr.msk.f32.gmra.mxu1 %vm645_vm3, %v3547_v51 }
 0x12c   :  { %2965 = vmatprep.mubr.msk.f32.mxu1 %vm645_vm3, %v3555_v56 }
 0x12f   :  { %2966 = vmatmul.mubr.msk.f32.gmra.mxu1 %vm645_vm3, %v3560_v62 }
 0x130   :  { %2968 = vmatprep.mubr.msk.f32.mxu1 %vm645_vm3, %v3567_v63 }
 0x133   :  { %2969 = vmatmul.mubr.msk.f32.gmra.mxu1 %vm645_vm3, %v3572_v2 }
 0x134   :  { %2971 = vmatprep.mubr.msk.f32.mxu1 %vm645_vm3, %v3581_v4 }
 0x137   :  { %2972 = vmatmul.mubr.msk.f32.gmra.mxu1 %vm645_vm3, %v3584_v6 }
 0x138   :  { %2974 = vmatprep.mubr.msk.f32.mxu1 %vm645_vm3, %v3591_v7 }
 0x13b   :  { %2975 = vmatmul.mubr.msk.f32.gmra.mxu1 %vm645_vm3, %v3598_v11 }
 0x13c   :  { %2977 = vmatprep.mubr.msk.f32.mxu1 %vm645_vm3, %v3605_v12 }
 0x13f   :  { %2978 = vmatmul.mubr.msk.f32.gmra.mxu1 %vm645_vm3, %v3608_v14 }
 0x140   :  { %2980 = vmatprep.mubr.msk.f32.mxu1 %vm645_vm3, %v3619_v17 }
 0x143   :  { %2981 = vmatmul.mubr.msk.f32.gmra.mxu1 %vm645_vm3, %v3622_v18 }
 0x151   :  { %v1477_v25 = vpop.permute.xlu1 %1476 }
 0x155   :  { %v1479_v27 = vpop.permute.xlu1 %1478 }
 0x159   :  { %v1481_v29 = vpop.permute.xlu0 %1480 }
 0x15d   :  { %v1483_v28 = vpop.permute.xlu1 %1482 }
 0x15e   :  { %2983 = vmatprep.subr.bf16.mxu0 %v1483_v28  ;;  %3079 = vmatprep.subr.bf16.mxu1 %v1483_v28 }
 0x15f   :  { %2984 = vmatpush3.bf16.msra.mxu0 %v1483_v28  ;;  %3087 = vmatpush3.bf16.msra.mxu1 %v1483_v28 }
 0x160   :  { %2985 = vmatprep.subr.bf16.mxu0 %v1481_v29  ;;  %3080 = vmatprep.subr.bf16.mxu1 %v1481_v29 }
 0x163   :  { %2986 = vmatpush3.bf16.msra.mxu0 %v1481_v29  ;;  %3088 = vmatpush3.bf16.msra.mxu1 %v1481_v29 }
 0x164   :  { %2987 = vmatprep.subr.bf16.mxu0 %v1479_v27  ;;  %3081 = vmatprep.subr.bf16.mxu1 %v1479_v27 }
 0x167   :  { %2988 = vmatpush3.bf16.msra.mxu0 %v1479_v27  ;;  %3089 = vmatpush3.bf16.msra.mxu1 %v1479_v27 }
 0x168   :  { %2989 = vmatprep.subr.bf16.mxu0 %v1477_v25  ;;  %3082 = vmatprep.subr.bf16.mxu1 %v1477_v25 }
 0x16b   :  { %2990 = vmatpush3.bf16.msra.mxu0 %v1477_v25  ;;  %3090 = vmatpush3.bf16.msra.mxu1 %v1477_v25  ;;  %v475_v25 = vadd.s32 16, %v3646_v31 }
 0x16d   :  { %vm593_vm14 = vcmp.ne.s32.totalorder %v3648_v32, %v475_v25 }
 0x16e   :  { %vm609_vm5 = vmand %vm577_vm13, %vm593_vm14  ;;  %vm583_vm13 = vcmp.eq.s32.totalorder %v3636_v22, %v3655_v35 }
 0x1e7   :  { %v2961_v38 = vpop.f32.mrf.mxu1 }
 0x1e8   :  { %v1073_v40 = vmul.f32 2.0, %v2961_v38  ;;  %v827_v41 = vpop.f32.mrf.mxu0  ;;  %v478_v38 = vadd.s32 40, %v3646_v31 }
 0x1e9   :  { %v3660_v50 = vrot.slane %v827_v41, %v1090_v33  ;;  %v993_v54 = vpop.f32.mrf.mxu1  ;;  %v477_v33 = vadd.s32 32, %v3646_v31 }
 0x1ea   :  { %v1072_v61 = vmul.f32 2.0, %v993_v54  ;;  %v2926_v0 = vpop.f32.mrf.mxu0  ;;  %vm596_vm6 = vcmp.ne.s32.totalorder %v3648_v32, %v478_v38 }
 0x1eb   :  { %v2964_v5 = vpop.f32.mrf.mxu1  ;;  %v1093_v10 = vsub.f32 %v3660_v50, %v1073_v40  ;;  %vm595_vm2 = vcmp.ne.s32.totalorder %v3648_v32, %v477_v33  ;;  %vm612_vm10 = vmand %vm580_vm4, %vm596_vm6  ;;  %vm584_vm4 = vcmp.eq.s32.totalorder %v3612_v15, %v3655_v35  ;;  %vm585_vm6 = vcmp.eq.s32.totalorder %v3640_v37, %v3655_v35 }
 0x1ec   :  { %v1075_v9 = vmul.f32 2.0, %v2964_v5  ;;  %v1092_v13 = vsub.f32 %v3660_v50, %v1072_v61  ;;  %v480_v5 = vadd.s32 56, %v3646_v31  ;;  %vm611_vm8 = vmand %vm579_vm15, %vm595_vm2 }
 0x1ed   :  { %v1003_v3 = vpop.f32.mrf.mxu1  ;;  %v3673_v27 = vsel %vm608_vm9, %v1093_v10, inf  ;;  %vm597_vm9 = vcmp.ne.s32.totalorder %v3648_v32, %v479_v45 }
 0x1ee   :  { %v1074_v28 = vmul.f32 2.0, %v1003_v3  ;;  %1134 = vmin.xlane.f32.xlu1 %v3673_v27  ;;  %v3676_v29 = vsel %vm607_vm11, %v1092_v13, inf  ;;  %v1095_v30 = vsub.f32 %v3660_v50, %v1075_v9  ;;  %v481_v13 = vadd.s32 64, %v3646_v31  ;;  %vm613_vm14 = vmand %vm581_vm7, %vm597_vm9 }
 0x1ef   :  { %v2967_v34 = vpop.f32.mrf.mxu1  ;;  %1132 = vmin.xlane.f32.xlu0 %v3676_v29  ;;  %vm582_vm11 = vcmp.eq.s32.totalorder %v3593_v8, %v3655_v35  ;;  %v485_v8 = vadd.s32 96, %v3646_v31  ;;  %vm586_vm9 = vcmp.eq.s32.totalorder %v3628_v19, %v3655_v35 }
 0x1f0   :  { %v1077_v40 = vmul.f32 2.0, %v2967_v34  ;;  %v3691_v61 = vsel %vm610_vm12, %v1095_v30, inf  ;;  %v1094_v59 = vsub.f32 %v3660_v50, %v1074_v28  ;;  %vm598_vm12 = vcmp.ne.s32.totalorder %v3648_v32, %v480_v5 }
 0x1f1   :  { %v1013_v41 = vpop.f32.mrf.mxu1  ;;  %v482_v34 = vadd.s32 72, %v3646_v31  ;;  %vm599_vm15 = vcmp.ne.s32.totalorder %v3648_v32, %v481_v13  ;;  %vm614_vm2 = vmand %vm582_vm11, %vm598_vm12  ;;  %vm602_vm11 = vcmp.ne.s32.totalorder %v3648_v32, %v484_v20  ;;  %v486_v13 = vadd.s32 104, %v3646_v31 }
 0x1f2   :  { %v1076_v54 = vmul.f32 2.0, %v1013_v41  ;;  %v1097_v9 = vsub.f32 %v3660_v50, %v1077_v40  ;;  %v3711_v30 = vsel %vm609_vm5, %v1094_v59, inf  ;;  %v483_v40 = vadd.s32 80, %v3646_v31  ;;  %vm615_vm7 = vmand %vm583_vm13, %vm599_vm15 }
 0x1f3   :  { %v2970_v44 = vpop.f32.mrf.mxu1  ;;  %1138 = vmin.xlane.f32.xlu0 %v3691_v61  ;;  %vm600_vm5 = vcmp.ne.s32.totalorder %v3648_v32, %v482_v34  ;;  %vm587_vm12 = vcmp.eq.s32.totalorder %v3642_v24, %v3655_v35  ;;  %v487_v34 = vadd.s32 112, %v3646_v31  ;;  %vm618_vm15 = vmand %vm586_vm9, %vm602_vm11  ;;  %v488_v20 = vadd.s32 120, %v3646_v31 }
 0x1f4   :  { %v1096_v0 = vsub.f32 %v3660_v50, %v1076_v54  ;;  %v1079_v25 = vmul.f32 2.0, %v2970_v44  ;;  %v3730_v1 = vsel %vm612_vm10, %v1097_v9, inf  ;;  %vm616_vm10 = vmand %vm584_vm4, %vm600_vm5  ;;  %vm604_vm4 = vcmp.ne.s32.totalorder %v3648_v32, %v486_v13 }
 0x1f5   :  { %v1023_v10 = vpop.f32.mrf.mxu1  ;;  %vm589_vm5 = vcmp.eq.s32.totalorder %v3644_v26, %v3655_v35  ;;  %vm590_vm9 = vcmp.eq.s32.totalorder %v3638_v23, %v3655_v35 }
 0x1f6   :  { %v1078_v3 = vmul.f32 2.0, %v1023_v10  ;;  %v3709_v28 = vsel %vm611_vm8, %v1096_v0, inf  ;;  %v1099_v44 = vsub.f32 %v3660_v50, %v1079_v25  ;;  %vm601_vm8 = vcmp.ne.s32.totalorder %v3648_v32, %v483_v40 }
 0x1f7   :  { %v2973_v33 = vpop.f32.mrf.mxu1  ;;  %1140 = vmin.xlane.f32.xlu1 %v3709_v28  ;;  %1136 = vmin.xlane.f32.xlu0 %v3711_v30  ;;  %vm617_vm13 = vmand %vm585_vm6, %vm601_vm8 }
 0x1f8   :  { %v1098_v16 = vsub.f32 %v3660_v50, %v1078_v3  ;;  %v1081_v41 = vmul.f32 2.0, %v2973_v33  ;;  %v3760_v3 = vsel %vm614_vm2, %v1099_v44, inf  ;;  %vm588_vm2 = vcmp.eq.s32.totalorder %v3634_v21, %v3655_v35 }
 0x1f9   :  { %v1033_v38 = vpop.f32.mrf.mxu1  ;;  %vm620_vm8 = vmand %vm588_vm2, %vm604_vm4 }
 0x1fa   :  { %v1080_v54 = vmul.f32 2.0, %v1033_v38  ;;  %v3734_v59 = vsel %vm613_vm14, %v1098_v16, inf  ;;  %v1101_v33 = vsub.f32 %v3660_v50, %v1081_v41  ;;  %vm603_vm14 = vcmp.ne.s32.totalorder %v3648_v32, %v485_v8 }
 0x1fb   :  { %v2976_v0 = vpop.f32.mrf.mxu1  ;;  %1144 = vmin.xlane.f32.xlu1 %v3734_v59  ;;  %1142 = vmin.xlane.f32.xlu0 %v3730_v1  ;;  %vm619_vm6 = vmand %vm587_vm12, %vm603_vm14 }
 0x1fc   :  { %v1100_v45 = vsub.f32 %v3660_v50, %v1080_v54  ;;  %v1083_v10 = vmul.f32 2.0, %v2976_v0  ;;  %v3787_v0 = vsel %vm616_vm10, %v1101_v33, inf  ;;  %vm606_vm10 = vcmp.ne.s32.totalorder %v3648_v32, %v488_v20 }
 0x1fd   :  { %v1043_v9 = vpop.f32.mrf.mxu1  ;;  %vm622_vm12 = vmand %vm590_vm9, %vm606_vm10 }
 0x1fe   :  { %v1082_v5 = vmul.f32 2.0, %v1043_v9  ;;  %v3758_v25 = vsel %vm615_vm7, %v1100_v45, inf  ;;  %v1103_v15 = vsub.f32 %v3660_v50, %v1083_v10  ;;  %vm605_vm7 = vcmp.ne.s32.totalorder %v3648_v32, %v487_v34 }
 0x1ff   :  { %v2979_v16 = vpop.f32.mrf.mxu1  ;;  %1148 = vmin.xlane.f32.xlu1 %v3758_v25  ;;  %1146 = vmin.xlane.f32.xlu0 %v3760_v3  ;;  %vm621_vm11 = vmand %vm589_vm5, %vm605_vm7 }
 0x200   :  { %v1102_v22 = vsub.f32 %v3660_v50, %v1082_v5  ;;  %v1085_v41 = vmul.f32 2.0, %v2979_v16  ;;  %v3806_v19 = vsel %vm618_vm15, %v1103_v15, inf }
 0x201   :  { %v1053_v38 = vpop.f32.mrf.mxu1 }
 0x202   :  { %v1084_v54 = vmul.f32 2.0, %v1053_v38  ;;  %v3785_v44 = vsel %vm617_vm13, %v1102_v22, inf  ;;  %v1105_v31 = vsub.f32 %v3660_v50, %v1085_v41 }
 0x203   :  { %v2982_v40 = vpop.f32.mrf.mxu1  ;;  %1152 = vmin.xlane.f32.xlu1 %v3785_v44  ;;  %1150 = vmin.xlane.f32.xlu0 %v3787_v0 }
 0x204   :  { %v1104_v37 = vsub.f32 %v3660_v50, %v1084_v54  ;;  %v1087_v10 = vmul.f32 2.0, %v2982_v40  ;;  %v3826_v33 = vsel %vm620_vm8, %v1105_v31, inf }
 0x205   :  { %v1063_v45 = vpop.f32.mrf.mxu1 }
 0x206   :  { %v1086_v9 = vmul.f32 2.0, %v1063_v45  ;;  %v3809_v5 = vsel %vm619_vm6, %v1104_v37, inf  ;;  %v1107_v16 = vsub.f32 %v3660_v50, %v1087_v10 }
 0x207   :  { %1156 = vmin.xlane.f32.xlu1 %v3809_v5  ;;  %1154 = vmin.xlane.f32.xlu0 %v3806_v19 }
 0x208   :  { %v1106_v24 = vsub.f32 %v3660_v50, %v1086_v9  ;;  %v3831_v21 = vsel %vm622_vm12, %v1107_v16, inf }
 0x20a   :  { %v3824_v8 = vsel %vm621_vm11, %v1106_v24, inf }
 0x20b   :  { %1160 = vmin.xlane.f32.xlu1 %v3824_v8  ;;  %1158 = vmin.xlane.f32.xlu0 %v3826_v33 }
 0x20f   :  { %1162 = vmin.xlane.f32.xlu0 %v3831_v21 }
 0x21c   :  { %1474 = vrot.lane.b32.xlu1 %v1127_v60, %s3189_s1 }
 0x225   :  { %1472 = vrot.lane.b32.xlu0 %v1126_v55, %s3189_s1 }
 0x277   :  { %v3842_v23 = vpop.xlane.xlu1 %1134 }
 0x278   :  { %v3844_v26 = vpop.xlane.xlu0 %1132  ;;  %vm1165_vm13 = vcmp.le.f32.partialorder %v3673_v27, %v3842_v23 }
 0x279   :  { %v3849_v35 = vsel %vm1165_vm13, %v3648_v32, 128  ;;  %vm1164_vm14 = vcmp.le.f32.partialorder %v3676_v29, %v3844_v26 }
 0x27a   :  { %v1211_v57 = vshra.s32 %v3849_v35, 16  ;;  %v3855_v58 = vsel %vm1164_vm14, %v3648_v32, 128 }
 0x27b   :  { %v1197_v52 = vshra.s32 %v3855_v58, 16 }
 0x27c   :  { %v3858_v53 = vpop.xlane.xlu0 %1138  ;;  %v3860_v55 = vcvt.s32.f32 %v1211_v57 }
 0x27d   :  { %4723 = vst [vmem:[#allocation2_spill] sm:$0xff] %v3858_v53  ;;  %v3862_v60 = vcvt.s32.f32 %v1197_v52  ;;  %vm1167_vm15 = vcmp.le.f32.partialorder %v3691_v61, %v3858_v53 }
 0x27e   :  { %1214 = vmin.xlane.f32.xlu0 %v3860_v55  ;;  %v3868_v50 = vsel %vm1167_vm15, %v3648_v32, 128 }
 0x27f   :  { %1200 = vmin.xlane.f32.xlu1 %v3862_v60  ;;  %v1239_v27 = vshra.s32 %v3868_v50, 16  ;;  %v1238_v53 = vand.u32 65535, %v3868_v50 }
 0x280   :  { %v3872_v29 = vpop.xlane.xlu1 %1140  ;;  %v3874_v22 = vpop.xlane.xlu0 %1136 }
 0x281   :  { %4724 = vst [vmem:[#allocation3_spill] sm:$0xff] %v3872_v29  ;;  %4725 = vst [vmem:[#allocation4_spill] sm:$0xff] %v3874_v22  ;;  %v3876_v13 = vcvt.s32.f32 %v1239_v27  ;;  %vm1166_vm2 = vcmp.le.f32.partialorder %v3711_v30, %v3874_v22  ;;  %vm1168_vm4 = vcmp.le.f32.partialorder %v3709_v28, %v3872_v29 }
 0x282   :  { %v3884_v61 = vsel %vm1166_vm2, %v3648_v32, 128  ;;  %v3887_v38 = vsel %vm1168_vm4, %v3648_v32, 128 }
 0x283   :  { %1242 = vmin.xlane.f32.xlu0 %v3876_v13  ;;  %v1225_v41 = vshra.s32 %v3884_v61, 16  ;;  %v1253_v28 = vshra.s32 %v3887_v38, 16 }
 0x284   :  { %v3889_v15 = vpop.xlane.xlu1 %1144  ;;  %v3891_v34 = vpop.xlane.xlu0 %1142 }
 0x285   :  { %4726 = vst [vmem:[#allocation5_spill] sm:$0xff] %v3889_v15  ;;  %4727 = vst [vmem:[#allocation6_spill] sm:$0xff] %v3891_v34  ;;  %vm1169_vm5 = vcmp.le.f32.partialorder %v3730_v1, %v3891_v34  ;;  %v3896_v30 = vcvt.s32.f32 %v1225_v41  ;;  %vm1170_vm6 = vcmp.le.f32.partialorder %v3734_v59, %v3889_v15  ;;  %v3913_v45 = vcvt.s32.f32 %v1253_v28 }
 0x286   :  { %v3900_v54 = vsel %vm1169_vm5, %v3648_v32, 128  ;;  %v3911_v1 = vsel %vm1170_vm6, %v3648_v32, 128  ;;  %v1196_v34 = vand.u32 65535, %v3855_v58  ;;  %v1224_v58 = vand.u32 65535, %v3884_v61 }
 0x287   :  { %1228 = vmin.xlane.f32.xlu1 %v3896_v30  ;;  %v1267_v20 = vshra.s32 %v3900_v54, 16  ;;  %v1281_v9 = vshra.s32 %v3911_v1, 16 }
 0x288   :  { %v3903_v40 = vpop.xlane.xlu1 %1148  ;;  %v3905_v37 = vpop.xlane.xlu0 %1146  ;;  %v1226_v50 = vcvt.s32.f32 %v1224_v58 }
 0x289   :  { %4728 = vst [vmem:[#allocation7_spill] sm:$0xff] %v3903_v40  ;;  %4729 = vst [vmem:[#allocation8_spill] sm:$0xff] %v3905_v37  ;;  %v3915_v10 = vcvt.s32.f32 %v1267_v20  ;;  %vm1171_vm7 = vcmp.le.f32.partialorder %v3760_v3, %v3905_v37  ;;  %vm1172_vm8 = vcmp.le.f32.partialorder %v3758_v25, %v3903_v40  ;;  %v3931_v16 = vcvt.s32.f32 %v1281_v9 }
 0x28a   :  { %v3927_v59 = vsel %vm1171_vm7, %v3648_v32, 128  ;;  %v3935_v3 = vsel %vm1172_vm8, %v3648_v32, 128 }
 0x28b   :  { %1256 = vmin.xlane.f32.xlu1 %v3913_v45  ;;  %1270 = vmin.xlane.f32.xlu0 %v3915_v10  ;;  %v1295_v57 = vshra.s32 %v3927_v59, 16  ;;  %v1309_v25 = vshra.s32 %v3935_v3, 16  ;;  %v1294_v61 = vand.u32 65535, %v3927_v59 }
 0x28c   :  { %v3922_v31 = vpop.xlane.xlu1 %1152  ;;  %v3924_v24 = vpop.xlane.xlu0 %1150 }
 0x28d   :  { %4730 = vst [vmem:[#allocation9_spill] sm:$0xff] %v3922_v31  ;;  %4731 = vst [vmem:[#allocation10_spill] sm:$0xff] %v3924_v24  ;;  %vm1173_vm9 = vcmp.le.f32.partialorder %v3787_v0, %v3924_v24  ;;  %v3940_v52 = vcvt.s32.f32 %v1295_v57  ;;  %vm1174_vm10 = vcmp.le.f32.partialorder %v3785_v44, %v3922_v31  ;;  %v3954_v0 = vcvt.s32.f32 %v1309_v25 }
 0x28e   :  { %v3948_v28 = vsel %vm1173_vm9, %v3648_v32, 128  ;;  %v3959_v57 = vsel %vm1174_vm10, %v3648_v32, 128 }
 0x28f   :  { %1284 = vmin.xlane.f32.xlu1 %v3931_v16  ;;  %v1323_v20 = vshra.s32 %v3948_v28, 16  ;;  %1298 = vmin.xlane.f32.xlu0 %v3940_v52  ;;  %v1337_v40 = vshra.s32 %v3959_v57, 16 }
 0x290   :  { %v3942_v27 = vpop.xlane.xlu1 %1156  ;;  %v3944_v41 = vpop.xlane.xlu0 %1154 }
 0x291   :  { %4732 = vst [vmem:[#allocation11_spill] sm:$0xff] %v3942_v27  ;;  %4733 = vst [vmem:[#allocation12_spill] sm:$0xff] %v3944_v41  ;;  %v3956_v9 = vcvt.s32.f32 %v1323_v20  ;;  %vm1175_vm11 = vcmp.le.f32.partialorder %v3806_v19, %v3944_v41  ;;  %vm1176_vm12 = vcmp.le.f32.partialorder %v3809_v5, %v3942_v27  ;;  %v3975_v25 = vcvt.s32.f32 %v1337_v40 }
 0x292   :  { %v3972_v44 = vsel %vm1175_vm11, %v3648_v32, 128  ;;  %v3979_v31 = vsel %vm1176_vm12, %v3648_v32, 128 }
 0x293   :  { %1312 = vmin.xlane.f32.xlu1 %v3954_v0  ;;  %1326 = vmin.xlane.f32.xlu0 %v3956_v9  ;;  %v1351_v20 = vshra.s32 %v3972_v44, 16  ;;  %v1365_v19 = vshra.s32 %v3979_v31, 16 }
 0x294   :  { %v3962_v36 = vpop.xlane.xlu1 %1160  ;;  %v3964_v24 = vpop.xlane.xlu0 %1158 }
 0x295   :  { %4734 = vst [vmem:[#allocation13_spill] sm:$0xff] %v3962_v36  ;;  %4735 = vst [vmem:[#allocation14_spill] sm:$0xff] %v3964_v24  ;;  %vm1177_vm13 = vcmp.le.f32.partialorder %v3826_v33, %v3964_v24  ;;  %vm1178_vm14 = vcmp.le.f32.partialorder %v3824_v8, %v3962_v36  ;;  %v3989_v5 = vcvt.s32.f32 %v1351_v20  ;;  %v3994_v41 = vcvt.s32.f32 %v1365_v19 }
 0x296   :  { %v3992_v40 = vsel %vm1177_vm13, %v3648_v32, 128  ;;  %v3999_v33 = vsel %vm1178_vm14, %v3648_v32, 128 }
 0x297   :  { %1340 = vmin.xlane.f32.xlu1 %v3975_v25  ;;  %v1379_v27 = vshra.s32 %v3992_v40, 16  ;;  %1354 = vmin.xlane.f32.xlu0 %v3989_v5  ;;  %v1393_v36 = vshra.s32 %v3999_v33, 16 }
 0x298   :  { %v1475_v37 = vpop.permute.xlu1 %1474  ;;  %v3982_v15 = vpop.xlane.xlu0 %1162 }
 0x299   :  { %4736 = vst [vmem:[#allocation15_spill] sm:$0xff] %v3982_v15  ;;  %2991 = vmatprep.subr.bf16.mxu0 %v1475_v37  ;;  %3083 = vmatprep.subr.bf16.mxu1 %v1475_v37  ;;  %vm1179_vm15 = vcmp.le.f32.partialorder %v3831_v21, %v3982_v15  ;;  %v4004_v8 = vcvt.s32.f32 %v1379_v27  ;;  %v4011_v24 = vcvt.s32.f32 %v1393_v36  ;;  %v1124_v27 = vpack.c.bf16 %v3399_v39, %v3402_v42 }
 0x29a   :  { %2992 = vmatpush3.bf16.msra.mxu0 %v1475_v37  ;;  %3091 = vmatpush3.bf16.msra.mxu1 %v1475_v37  ;;  %v4008_v37 = vsel %vm1179_vm15, %v3648_v32, 128  ;;  %v1210_v15 = vand.u32 65535, %v3849_v35  ;;  %v1240_v35 = vcvt.s32.f32 %v1238_v53 }
 0x29b   :  { %1368 = vmin.xlane.f32.xlu1 %v3994_v41  ;;  %v1407_v19 = vshra.s32 %v4008_v37, 16  ;;  %1382 = vmin.xlane.f32.xlu0 %v4004_v8 }
 0x29c   :  { %v1473_v20 = vpop.permute.xlu0 %1472  ;;  %v1212_v36 = vcvt.s32.f32 %v1210_v15 }
 0x29d   :  { %2993 = vmatprep.subr.bf16.mxu0 %v1473_v20  ;;  %3084 = vmatprep.subr.bf16.mxu1 %v1473_v20  ;;  %v4014_v21 = vcvt.s32.f32 %v1407_v19  ;;  %v1198_v19 = vcvt.s32.f32 %v1196_v34  ;;  %v1266_v34 = vand.u32 65535, %v3900_v54  ;;  %v1322_v54 = vand.u32 65535, %v3948_v28 }
 0x29e   :  { %2994 = vmatpush3.bf16.msra.mxu0 %v1473_v20  ;;  %3092 = vmatpush3.bf16.msra.mxu1 %v1473_v20  ;;  %v1378_v28 = vand.u32 65535, %v3992_v40 }
 0x29f   :  { %1396 = vmin.xlane.f32.xlu1 %v4011_v24  ;;  %1410 = vmin.xlane.f32.xlu0 %v4014_v21  ;;  %v1268_v53 = vcvt.s32.f32 %v1266_v34 }
 0x2b5   :  { %1468 = vrot.lane.b32.xlu0 %v1124_v27, %s3189_s1  ;;  %v1125_v27 = vpack.c.bf16 %v3408_v46, %v3414_v49  ;;  %v1350_v46 = vand.u32 65535, %v3972_v44 }
 0x307   :  { %v4023_v20 = vpop.xlane.xlu0 %1214 }
 0x308   :  { %v4025_v29 = vpop.xlane.xlu1 %1200  ;;  %vm1216_vm2 = vcmp.eq.f32.partialorder %v3860_v55, %v4023_v20 }
 0x309   :  { %v1217_v22 = vsel %vm1216_vm2, %v1212_v36, inf  ;;  %vm1202_vm4 = vcmp.eq.f32.partialorder %v3862_v60, %v4025_v29 }
 0x30a   :  { %1218 = vmin.xlane.f32.xlu1 %v1217_v22  ;;  %v1203_v39 = vsel %vm1202_vm4, %v1198_v19, inf }
 0x30b   :  { %1204 = vmin.xlane.f32.xlu0 %v1203_v39  ;;  %v1324_v39 = vcvt.s32.f32 %v1322_v54  ;;  %v636_v54 = vmul.f32 %v3572_v2, %v3572_v2 }
 0x30c   :  { %v4032_v42 = vpop.xlane.xlu0 %1242 }
 0x30d   :  { %vm1244_vm5 = vcmp.eq.f32.partialorder %v3876_v13, %v4032_v42 }
 0x30e   :  { %v1245_v15 = vsel %vm1244_vm5, %v1240_v35, inf  ;;  %v1352_v35 = vcvt.s32.f32 %v1350_v46  ;;  %v667_v46 = vsel %vm645_vm3, %v636_v54, 0.0 }
 0x30f   :  { %1246 = vmin.xlane.f32.xlu0 %v1245_v15  ;;  %v1380_v15 = vcvt.s32.f32 %v1378_v28 }
 0x310   :  { %v4037_v55 = vpop.xlane.xlu1 %1228 }
 0x311   :  { %vm1230_vm6 = vcmp.eq.f32.partialorder %v3896_v30, %v4037_v55  ;;  %v1296_v30 = vcvt.s32.f32 %v1294_v61  ;;  %v1252_v61 = vand.u32 65535, %v3887_v38  ;;  %v638_v38 = vmul.f32 %v3584_v6, %v3584_v6 }
 0x312   :  { %v1231_v60 = vsel %vm1230_vm6, %v1226_v50, inf  ;;  %v1406_v50 = vand.u32 65535, %v4008_v37 }
 0x313   :  { %1232 = vmin.xlane.f32.xlu0 %v1231_v60  ;;  %v630_v60 = vmul.f32 %v3405_v43, %v3405_v43 }
 0x314   :  { %v4042_v22 = vpop.xlane.xlu0 %1270  ;;  %v1408_v34 = vcvt.s32.f32 %v1406_v50  ;;  %v4074_v40 = vpop.xlane.xlu1 %1256 }
 0x315   :  { %vm1272_vm7 = vcmp.eq.f32.partialorder %v3915_v10, %v4042_v22  ;;  %v649_v37 = vsel %vm645_vm3, %v630_v60, 0.0  ;;  %vm1258_vm13 = vcmp.eq.f32.partialorder %v3913_v45, %v4074_v40  ;;  %v673_v45 = vsel %vm645_vm3, %v638_v38, 0.0 }
 0x316   :  { %v1273_v13 = vsel %vm1272_vm7, %v1268_v53, inf }
 0x317   :  { %1274 = vmin.xlane.f32.xlu0 %v1273_v13 }
 0x318   :  { %v4049_v36 = vpop.xlane.xlu0 %1298  ;;  %v4081_v53 = vpop.xlane.xlu1 %1284 }
 0x319   :  { %vm1300_vm8 = vcmp.eq.f32.partialorder %v3940_v52, %v4049_v36  ;;  %vm1286_vm14 = vcmp.eq.f32.partialorder %v3931_v16, %v4081_v53 }
 0x31a   :  { %v1301_v19 = vsel %vm1300_vm8, %v1296_v30, inf }
 0x31b   :  { %1470 = vrot.lane.b32.xlu1 %v1125_v27, %s3189_s1  ;;  %1302 = vmin.xlane.f32.xlu0 %v1301_v19  ;;  %v1254_v19 = vcvt.s32.f32 %v1252_v61  ;;  %v1392_v61 = vand.u32 65535, %v3999_v33 }
 0x31c   :  { %v4055_v10 = vpop.xlane.xlu0 %1326  ;;  %v4087_v27 = vpop.xlane.xlu1 %1312 }
 0x31d   :  { %vm1328_vm9 = vcmp.eq.f32.partialorder %v3956_v9, %v4055_v10  ;;  %vm1314_vm15 = vcmp.eq.f32.partialorder %v3954_v0, %v4087_v27 }
 0x31e   :  { %v1329_v49 = vsel %vm1328_vm9, %v1324_v39, inf  ;;  %v1280_v39 = vand.u32 65535, %v3911_v1  ;;  %v640_v1 = vmul.f32 %v3598_v11, %v3598_v11 }
 0x31f   :  { %1330 = vmin.xlane.f32.xlu0 %v1329_v49  ;;  %v1259_v49 = vsel %vm1258_vm13, %v1254_v19, inf  ;;  %v629_v19 = vmul.f32 %v3411_v47, %v3411_v47 }
 0x320   :  { %v4060_v59 = vpop.xlane.xlu0 %1354  ;;  %v1282_v28 = vcvt.s32.f32 %v1280_v39  ;;  %v631_v39 = vmul.f32 %v3543_v48, %v3543_v48 }
 0x321   :  { %vm1356_vm10 = vcmp.eq.f32.partialorder %v3989_v5, %v4060_v59 }
 0x322   :  { %v1357_v52 = vsel %vm1356_vm10, %v1352_v35, inf  ;;  %v4100_v35 = vpop.xlane.xlu1 %1340  ;;  %v652_v33 = vsel %vm645_vm3, %v631_v39, 0.0 }
 0x323   :  { %1358 = vmin.xlane.f32.xlu0 %v1357_v52  ;;  %v1308_v52 = vand.u32 65535, %v3935_v3  ;;  %v642_v3 = vmul.f32 %v3608_v14, %v3608_v14  ;;  %vm1342_vm2 = vcmp.eq.f32.partialorder %v3975_v25, %v4100_v35 }
 0x324   :  { %v4065_v58 = vpop.xlane.xlu0 %1382 }
 0x325   :  { %vm1384_vm11 = vcmp.eq.f32.partialorder %v4004_v8, %v4065_v58  ;;  %v632_v8 = vmul.f32 %v3547_v51, %v3547_v51  ;;  %v1310_v50 = vcvt.s32.f32 %v1308_v52  ;;  %v685_v0 = vsel %vm645_vm3, %v642_v3, 0.0 }
 0x326   :  { %v1385_v9 = vsel %vm1384_vm11, %v1380_v15, inf  ;;  %v1287_v15 = vsel %vm1286_vm14, %v1282_v28, inf  ;;  %v4109_v16 = vpop.xlane.xlu1 %1368  ;;  %v637_v28 = vmul.f32 %v3581_v4, %v3581_v4 }
 0x327   :  { %1386 = vmin.xlane.f32.xlu0 %v1385_v9  ;;  %v655_v13 = vsel %vm645_vm3, %v632_v8, 0.0  ;;  %v1336_v9 = vand.u32 65535, %v3959_v57  ;;  %v644_v57 = vmul.f32 %v3622_v18, %v3622_v18  ;;  %vm1370_vm4 = vcmp.eq.f32.partialorder %v3994_v41, %v4109_v16 }
 0x328   :  { %v4070_v44 = vpop.xlane.xlu0 %1410  ;;  %v646_v41 = vsel %vm645_vm3, %v629_v19, 0.0  ;;  %v670_v52 = vsel %vm645_vm3, %v637_v28, 0.0  ;;  %v1277_v28 = vcvt.f32.s32 %v4042_v22 }
 0x329   :  { %vm1412_vm12 = vcmp.eq.f32.partialorder %v4014_v21, %v4070_v44  ;;  %v634_v21 = vmul.f32 %v3560_v62, %v3560_v62  ;;  %v1338_v60 = vcvt.s32.f32 %v1336_v9  ;;  %v691_v25 = vsel %vm645_vm3, %v644_v57, 0.0 }
 0x32a   :  { %v1413_v5 = vsel %vm1412_vm12, %v1408_v34, inf  ;;  %v679_v34 = vsel %vm645_vm3, %v640_v1, 0.0  ;;  %v641_v1 = vmul.f32 %v3605_v12, %v3605_v12  ;;  %v643_v9 = vmul.f32 %v3619_v17, %v3619_v17 }
 0x32b   :  { %1414 = vmin.xlane.f32.xlu0 %v1413_v5  ;;  %v661_v30 = vsel %vm645_vm3, %v634_v21, 0.0  ;;  %v1315_v5 = vsel %vm1314_vm15, %v1310_v50, inf  ;;  %v1343_v8 = vsel %vm1342_vm2, %v1338_v60, inf  ;;  %v1207_v60 = vcvt.f32.s32 %v4025_v29 }
 0x32c   :  { %v682_v50 = vsel %vm645_vm3, %v641_v1, 0.0  ;;  %v1469_v3 = vpop.permute.xlu0 %1468  ;;  %v1235_v29 = vcvt.f32.s32 %v4037_v55  ;;  %v1278_v1 = vshll.u32 %v1277_v28, 16 }
 0x32f   :  { %650 = vadd.xlane.f32.xlu0 %v649_v37  ;;  %v1364_v37 = vand.u32 65535, %v3979_v31  ;;  %v1394_v31 = vcvt.s32.f32 %v1392_v61 }
 0x331   :  { %v1366_v21 = vcvt.s32.f32 %v1364_v37 }
 0x333   :  { %656 = vadd.xlane.f32.xlu0 %v655_v13  ;;  %v4122_v13 = vpop.xlane.xlu1 %1396 }
 0x334   :  { %vm1398_vm5 = vcmp.eq.f32.partialorder %v4011_v24, %v4122_v13 }
 0x335   :  { %v1399_v54 = vsel %vm1398_vm5, %v1394_v31, inf }
 0x337   :  { %662 = vadd.xlane.f32.xlu0 %v661_v30  ;;  %v1371_v30 = vsel %vm1370_vm4, %v1366_v21, inf  ;;  %v1208_v21 = vshll.u32 %v1207_v60, 16 }
 0x33b   :  { %668 = vadd.xlane.f32.xlu0 %v667_v46  ;;  %v633_v46 = vmul.f32 %v3555_v56, %v3555_v56 }
 0x33d   :  { %v658_v24 = vsel %vm645_vm3, %v633_v46, 0.0 }
 0x33f   :  { %1260 = vmin.xlane.f32.xlu1 %v1259_v49  ;;  %674 = vadd.xlane.f32.xlu0 %v673_v45  ;;  %v635_v49 = vmul.f32 %v3567_v63, %v3567_v63  ;;  %v639_v45 = vmul.f32 %v3591_v7, %v3591_v7 }
 0x341   :  { %v664_v38 = vsel %vm645_vm3, %v635_v49, 0.0 }
 0x343   :  { %1288 = vmin.xlane.f32.xlu1 %v1287_v15  ;;  %680 = vadd.xlane.f32.xlu0 %v679_v34  ;;  %v676_v15 = vsel %vm645_vm3, %v639_v45, 0.0  ;;  %v688_v34 = vsel %vm645_vm3, %v643_v9, 0.0  ;;  %v1263_v45 = vcvt.f32.s32 %v4074_v40  ;;  %v1319_v40 = vcvt.f32.s32 %v4087_v27 }
 0x347   :  { %1316 = vmin.xlane.f32.xlu1 %v1315_v5  ;;  %686 = vadd.xlane.f32.xlu0 %v685_v0  ;;  %v1221_v5 = vcvt.f32.s32 %v4023_v20 }
 0x349   :  { %v1222_v0 = vshll.u32 %v1221_v5, 16  ;;  %v1291_v5 = vcvt.f32.s32 %v4081_v53 }
 0x34b   :  { %1344 = vmin.xlane.f32.xlu1 %v1343_v8  ;;  %692 = vadd.xlane.f32.xlu0 %v691_v25 }
 0x34f   :  { %1372 = vmin.xlane.f32.xlu1 %v1371_v30 }
 0x353   :  { %1400 = vmin.xlane.f32.xlu1 %v1399_v54  ;;  %v1249_v54 = vcvt.f32.s32 %v4032_v42 }
 0x355   :  { %v1250_v39 = vshll.u32 %v1249_v54, 16 }
 0x357   :  { %647 = vadd.xlane.f32.xlu1 %v646_v41  ;;  %v3191_v41 = vmov 1.0|1.0  }
 0x35b   :  { %653 = vadd.xlane.f32.xlu1 %v652_v33  ;;  %v1236_v33 = vshll.u32 %v1235_v29, 16  ;;  %v1320_v29 = vshll.u32 %v1319_v40, 16 }
 0x35f   :  { %659 = vadd.xlane.f32.xlu1 %v658_v24 }
 0x363   :  { %665 = vadd.xlane.f32.xlu1 %v664_v38 }
 0x367   :  { %671 = vadd.xlane.f32.xlu1 %v670_v52 }
 0x36b   :  { %677 = vadd.xlane.f32.xlu1 %v676_v15 }
 0x36f   :  { %683 = vadd.xlane.f32.xlu1 %v682_v50  ;;  %v1305_v50 = vcvt.f32.s32 %v4049_v36  ;;  %v1361_v36 = vcvt.f32.s32 %v4060_v59  ;;  %v1389_v59 = vcvt.f32.s32 %v4065_v58 }
 0x373   :  { %689 = vadd.xlane.f32.xlu1 %v688_v34  ;;  %v1264_v34 = vshll.u32 %v1263_v45, 16  ;;  %v1417_v45 = vcvt.f32.s32 %v4070_v44 }
 0x393   :  { %v1219_v37 = vpop.xlane.xlu1 %1218 }
 0x394   :  { %v1220_v8 = vcvt.f32.s32 %v1219_v37  ;;  %v1205_v57 = vpop.xlane.xlu0 %1204 }
 0x395   :  { %v1206_v61 = vcvt.f32.s32 %v1205_v57  ;;  %v1306_v57 = vshll.u32 %v1305_v50, 16  ;;  %v1403_v50 = vcvt.f32.s32 %v4122_v13 }
 0x396   :  { %v1223_v25 = vadd.s32 %v1222_v0, %v1220_v8 }
 0x397   :  { %v1209_v30 = vadd.s32 %v1208_v21, %v1206_v61  ;;  %v1471_v31 = vpop.permute.xlu1 %1470  ;;  %v1333_v21 = vcvt.f32.s32 %v4055_v10  ;;  %v1292_v61 = vshll.u32 %v1291_v5, 16 }
 0x398   :  { %2995 = vmatprep.subr.bf16.mxu0 %v1471_v31  ;;  %3085 = vmatprep.subr.bf16.mxu1 %v1471_v31  ;;  %v1247_v19 = vpop.xlane.xlu0 %1246  ;;  %vm1421_vm3 = vcmp.eq.s32.totalorder %v3648_v32, %v1223_v25 }
 0x399   :  { %2996 = vmatpush3.bf16.msra.mxu0 %v1471_v31  ;;  %3093 = vmatpush3.bf16.msra.mxu1 %v1471_v31  ;;  %vm1420_vm6 = vcmp.eq.s32.totalorder %v3648_v32, %v1209_v30  ;;  %v1248_v20 = vcvt.f32.s32 %v1247_v19  ;;  %v1334_v54 = vshll.u32 %v1333_v21, 16 }
 0x39a   :  { %2997 = vmatprep.subr.bf16.mxu0 %v1469_v3  ;;  %3086 = vmatprep.subr.bf16.mxu1 %v1469_v3  ;;  %vm2621_vm7 = vmpackc.low %vm1421_vm3, %vm1420_vm6 }
 0x39b   :  { %2999 = vmatprep.mubr.msk.bf16.mxu0 %vm2621_vm7, %v3191_v41  ;;  %v1251_v46 = vadd.s32 %v1250_v39, %v1248_v20  ;;  %v1347_v20 = vcvt.f32.s32 %v4100_v35  ;;  %v1375_v35 = vcvt.f32.s32 %v4109_v16 }
 0x39c   :  { %v1233_v42 = vpop.xlane.xlu0 %1232 }
 0x39d   :  { %2998 = vmatpush3.bf16.msra.mxu0 %v1469_v3  ;;  %3094 = vmatpush3.bf16.msra.mxu1 %v1469_v3  ;;  %v1234_v24 = vcvt.f32.s32 %v1233_v42  ;;  %vm1423_vm8 = vcmp.eq.s32.totalorder %v3648_v32, %v1251_v46  ;;  %v1376_v16 = vshll.u32 %v1375_v35, 16 }
 0x39f   :  { %v1237_v49 = vadd.s32 %v1236_v33, %v1234_v24  ;;  %v1362_v33 = vshll.u32 %v1361_v36, 16 }
 0x3a0   :  { %v1275_v55 = vpop.xlane.xlu0 %1274 }
 0x3a1   :  { %vm1422_vm9 = vcmp.eq.s32.totalorder %v3648_v32, %v1237_v49  ;;  %v1276_v15 = vcvt.f32.s32 %v1275_v55  ;;  %v1348_v49 = vshll.u32 %v1347_v20, 16 }
 0x3a2   :  { %vm2623_vm10 = vmpackc.low %vm1423_vm8, %vm1422_vm9 }
 0x3a3   :  { %3000 = vmatmul.mubr.msk.bf16.vlgmr.msra.gmra.mxu0 %vm2623_vm10, %v3191_v41  ;;  %v1279_v60 = vadd.s32 %v1278_v1, %v1276_v15  ;;  %v1390_v1 = vshll.u32 %v1389_v59, 16 }
 0x3a4   :  { %v1303_v38 = vpop.xlane.xlu0 %1302 }
 0x3a5   :  { %v1304_v37 = vcvt.f32.s32 %v1303_v38  ;;  %vm1425_vm12 = vcmp.eq.s32.totalorder %v3648_v32, %v1279_v60 }
 0x3a7   :  { %v1307_v30 = vadd.s32 %v1306_v57, %v1304_v37  ;;  %v1404_v37 = vshll.u32 %v1403_v50, 16 }
 0x3a8   :  { %v1331_v52 = vpop.xlane.xlu0 %1330 }
 0x3a9   :  { %v1332_v31 = vcvt.f32.s32 %v1331_v52  ;;  %vm1427_vm15 = vcmp.eq.s32.totalorder %v3648_v32, %v1307_v30  ;;  %v4737_v30 = vld [vmem:[#allocation4_spill] sm:$0xff] }
 0x3ab   :  { %v1335_v42 = vadd.s32 %v1334_v54, %v1332_v31  ;;  %v4738_v54 = vld [vmem:[#allocation2_spill] sm:$0xff] }
 0x3ac   :  { %v1359_v0 = vpop.xlane.xlu0 %1358 }
 0x3ad   :  { %v1360_v27 = vcvt.f32.s32 %v1359_v0  ;;  %vm1429_vm5 = vcmp.eq.s32.totalorder %v3648_v32, %v1335_v42 }
 0x3af   :  { %v1363_v55 = vadd.s32 %v1362_v33, %v1360_v27 }
 0x3b0   :  { %v1387_v19 = vpop.xlane.xlu0 %1386 }
 0x3b1   :  { %v1388_v28 = vcvt.f32.s32 %v1387_v19  ;;  %vm1431_vm6 = vcmp.eq.s32.totalorder %v3648_v32, %v1363_v55 }
 0x3b4   :  { %v1415_v52 = vpop.xlane.xlu0 %1414 }
 0x3b8   :  { %v651_v21 = vpop.xlane.xlu0 %650 }
 0x3b9   :  { %v1590_v40 = vadd.f32 %v3842_v23, %v651_v21 }
 0x3bc   :  { %v657_v36 = vpop.xlane.xlu0 %656 }
 0x3bd   :  { %v1592_v19 = vadd.f32 %v4738_v54, %v657_v36 }
 0x3bf   :  { %v1608_v20 = vmax.f32 %v1592_v19, 0.0 }
 0x3c1   :  { %v1624_v42 = vmul.f32 -10.0, %v1608_v20 }
 0x3c8   :  { %v1261_v9 = vpop.xlane.xlu1 %1260 }
 0x3c9   :  { %v1262_v3 = vcvt.f32.s32 %v1261_v9  ;;  %v1416_v9 = vcvt.f32.s32 %v1415_v52 }
 0x3cb   :  { %v1265_v8 = vadd.s32 %v1264_v34, %v1262_v3  ;;  %v1391_v34 = vadd.s32 %v1390_v1, %v1388_v28  ;;  %v1418_v3 = vshll.u32 %v1417_v45, 16 }
 0x3cc   :  { %v1289_v22 = vpop.xlane.xlu1 %1288 }
 0x3cd   :  { %v1290_v25 = vcvt.f32.s32 %v1289_v22  ;;  %vm1424_vm11 = vcmp.eq.s32.totalorder %v3648_v32, %v1265_v8  ;;  %v1419_v0 = vadd.s32 %v1418_v3, %v1416_v9  ;;  %vm1433_vm10 = vcmp.eq.s32.totalorder %v3648_v32, %v1391_v34  ;;  %v663_v9 = vpop.xlane.xlu0 %662  ;;  %v4739_v3 = vld [vmem:[#allocation3_spill] sm:$0xff] }
 0x3ce   :  { %vm2625_vm13 = vmpackc.low %vm1425_vm12, %vm1424_vm11 }
 0x3cf   :  { %v1293_v53 = vadd.s32 %v1292_v61, %v1290_v25  ;;  %3003 = vmatprep.mubr.msk.bf16.mxu0 %vm2625_vm13, %v3191_v41  ;;  %vm1435_vm13 = vcmp.eq.s32.totalorder %v3648_v32, %v1419_v0 }
 0x3d0   :  { %v1317_v10 = vpop.xlane.xlu1 %1316 }
 0x3d1   :  { %v1318_v39 = vcvt.f32.s32 %v1317_v10  ;;  %vm1426_vm14 = vcmp.eq.s32.totalorder %v3648_v32, %v1293_v53  ;;  %v1606_v53 = vmax.f32 %v1590_v40, 0.0  ;;  %v669_v34 = vpop.xlane.xlu0 %668 }
 0x3d2   :  { %vm2627_vm2 = vmpackc.low %vm1427_vm15, %vm1426_vm14  ;;  %vm1687_vm15 = vcmp.lt.f32.partialorder %v4737_v30, inf }
 0x3d3   :  { %v1321_v46 = vadd.s32 %v1320_v29, %v1318_v39  ;;  %3004 = vmatmul.mubr.msk.bf16.gmra.mxu0 %vm2627_vm2, %v3191_v41  ;;  %vm1688_vm2 = vcmp.lt.f32.partialorder %v4738_v54, inf }
 0x3d4   :  { %v1345_v24 = vpop.xlane.xlu1 %1344 }
 0x3d5   :  { %v1346_v38 = vcvt.f32.s32 %v1345_v24  ;;  %vm1428_vm4 = vcmp.eq.s32.totalorder %v3648_v32, %v1321_v46  ;;  %v1643_v46 = vmul.f32 1.442695, %v1624_v42  ;;  %v675_v0 = vpop.xlane.xlu0 %674 }
 0x3d6   :  { %vm2629_vm3 = vmpackc.low %vm1429_vm5, %vm1428_vm4  ;;  %vm1685_vm4 = vcmp.lt.f32.partialorder %v3844_v26, inf  ;;  %vm1686_vm5 = vcmp.lt.f32.partialorder %v3842_v23, inf }
 0x3d7   :  { %v1349_v15 = vadd.s32 %v1348_v49, %v1346_v38  ;;  %3007 = vmatprep.mubr.msk.bf16.mxu1 %vm2629_vm3, %v3191_v41 }
 0x3d8   :  { %v1373_v58 = vpop.xlane.xlu1 %1372 }
 0x3d9   :  { %vm1430_vm7 = vcmp.eq.s32.totalorder %v3648_v32, %v1349_v15  ;;  %v1374_v5 = vcvt.f32.s32 %v1373_v58  ;;  %v681_v19 = vpop.xlane.xlu0 %680 }
 0x3da   :  { %vm2631_vm8 = vmpackc.low %vm1431_vm6, %vm1430_vm7  ;;  %vm1689_vm7 = vcmp.lt.f32.partialorder %v4739_v3, inf }
 0x3db   :  { %3008 = vmatmul.mubr.msk.bf16.vlgmr.msra.gmra.mxu1 %vm2631_vm8, %v3191_v41  ;;  %v1377_v44 = vadd.s32 %v1376_v16, %v1374_v5 }
 0x3dc   :  { %v1401_v60 = vpop.xlane.xlu1 %1400 }
 0x3dd   :  { %v1402_v8 = vcvt.f32.s32 %v1401_v60  ;;  %vm1432_vm9 = vcmp.eq.s32.totalorder %v3648_v32, %v1377_v44  ;;  %v4740_v60 = vld [vmem:[#allocation6_spill] sm:$0xff] }
 0x3de   :  { %vm2633_vm11 = vmpackc.low %vm1433_vm10, %vm1432_vm9  ;;  %vm1690_vm8 = vcmp.lt.f32.partialorder %v4740_v60, inf }
 0x3df   :  { %v1405_v13 = vadd.s32 %v1404_v37, %v1402_v8  ;;  %3011 = vmatprep.mubr.msk.bf16.mxu1 %vm2633_vm11, %v3191_v41  ;;  %v1594_v37 = vadd.f32 %v4740_v60, %v663_v9 }
 0x3e0   :  { %v648_v57 = vpop.xlane.xlu1 %647 }
 0x3e1   :  { %vm1434_vm12 = vcmp.eq.s32.totalorder %v3648_v32, %v1405_v13  ;;  %v1589_v22 = vadd.f32 %v3844_v26, %v648_v57  ;;  %v1622_v32 = vmul.f32 -10.0, %v1606_v53  ;;  %v4741_v13 = vld [vmem:[#allocation5_spill] sm:$0xff] }
 0x3e2   :  { %vm2635_vm14 = vmpackc.low %vm1435_vm13, %vm1434_vm12  ;;  %vm1691_vm3 = vcmp.lt.f32.partialorder %v4741_v13, inf }
 0x3e3   :  { %3012 = vmatmul.mubr.msk.bf16.gmra.mxu1 %vm2635_vm14, %v3191_v41  ;;  %v1605_v25 = vmax.f32 %v1589_v22, 0.0  ;;  %v1639_v39 = vmul.f32 1.442695, %v1622_v32  ;;  %v1610_v22 = vmax.f32 %v1594_v37, 0.0  ;;  %v4744_v32 = vld [vmem:[#allocation10_spill] sm:$0xff] }
 0x3e4   :  { %v654_v61 = vpop.xlane.xlu1 %653  ;;  %v1598_v20 = vadd.f32 %v4744_v32, %v675_v0  ;;  %vm1694_vm12 = vcmp.lt.f32.partialorder %v4744_v32, inf }
 0x3e5   :  { %v1591_v31 = vadd.f32 %v4737_v30, %v654_v61  ;;  %v1621_v10 = vmul.f32 -10.0, %v1605_v25  ;;  %v4742_v61 = vld [vmem:[#allocation8_spill] sm:$0xff]  ;;  %v4743_v25 = vld [vmem:[#allocation7_spill] sm:$0xff] }
 0x3e6   :  { %v1596_v40 = vadd.f32 %v4742_v61, %v669_v34  ;;  %vm1692_vm6 = vcmp.lt.f32.partialorder %v4742_v61, inf  ;;  %vm1693_vm11 = vcmp.lt.f32.partialorder %v4743_v25, inf }
 0x3e7   :  { %v1607_v29 = vmax.f32 %v1591_v31, 0.0  ;;  %v1637_v27 = vmul.f32 1.442695, %v1621_v10  ;;  %v1626_v10 = vmul.f32 -10.0, %v1610_v22 }
 0x3e8   :  { %v660_v1 = vpop.xlane.xlu1 %659 }
 0x3e9   :  { %v1623_v41 = vmul.f32 -10.0, %v1607_v29  ;;  %3106 = vpow2.f32 %v1637_v27  ;;  %v1593_v44 = vadd.f32 %v4739_v3, %v660_v1  ;;  %v1612_v29 = vmax.f32 %v1596_v40, 0.0 }
 0x3ea   :  { %3108 = vpow2.f32 %v1639_v39 }
 0x3eb   :  { %v1641_v33 = vmul.f32 1.442695, %v1623_v41  ;;  %v1609_v8 = vmax.f32 %v1593_v44, 0.0 }
 0x3ec   :  { %v666_v16 = vpop.xlane.xlu1 %665 }
 0x3ed   :  { %3110 = vpow2.f32 %v1641_v33  ;;  %v1595_v57 = vadd.f32 %v4741_v13, %v666_v16  ;;  %v1625_v36 = vmul.f32 -10.0, %v1609_v8  ;;  %v4745_v33 = vld [vmem:[#allocation9_spill] sm:$0xff]  ;;  %v4748_v16 = vld [vmem:[#allocation14_spill] sm:$0xff] }
 0x3ee   :  { %3112 = vpow2.f32 %v1643_v46  ;;  %v4749_v8 = vld [vmem:[#allocation13_spill] sm:$0xff]  ;;  %vm1695_vm9 = vcmp.lt.f32.partialorder %v4745_v33, inf }
 0x3ef   :  { %v1611_v53 = vmax.f32 %v1595_v57, 0.0  ;;  %v1645_v39 = vmul.f32 1.442695, %v1625_v36  ;;  %vm1699_vm14 = vcmp.lt.f32.partialorder %v4749_v8, inf }
 0x3f0   :  { %v672_v5 = vpop.xlane.xlu1 %671 }
 0x3f1   :  { %v1597_v31 = vadd.f32 %v4743_v25, %v672_v5  ;;  %v1627_v42 = vmul.f32 -10.0, %v1611_v53  ;;  %3114 = vpow2.f32 %v1645_v39  ;;  %v4750_v53 = vld [vmem:[#allocation15_spill] sm:$0xff] }
 0x3f3   :  { %v1613_v27 = vmax.f32 %v1597_v31, 0.0 }
 0x3f4   :  { %v678_v21 = vpop.xlane.xlu1 %677 }
 0x3f5   :  { %v1599_v46 = vadd.f32 %v4745_v33, %v678_v21 }
 0x3f6   :  { %v3107_v24 = vpop.eup %3106 }
 0x3f7   :  { %v3109_v35 = vpop.eup %3108  ;;  %v1615_v1 = vmax.f32 %v1599_v46, 0.0 }
 0x3f8   :  { %v684_v41 = vpop.xlane.xlu1 %683 }
 0x3f9   :  { %v1631_v0 = vmul.f32 -10.0, %v1615_v1 }
 0x3fa   :  { %v3111_v28 = vpop.eup %3110 }
 0x3fb   :  { %v3113_v58 = vpop.eup %3112 }
 0x463   :  { %v3001_v59 = vpop.f32.mrf.mxu0 }
 0x464   :  { %v1671_v45 = vmul.f32 %v3111_v28, %v3001_v59  ;;  %v1647_v59 = vmul.f32 1.442695, %v1626_v10  ;;  %v1657_v10 = vmul.f32 1.442695, %v1631_v0 }
 0x465   :  { %v1526_v49 = vpop.f32.mrf.mxu0 }
 0x466   :  { %v1669_v55 = vmul.f32 %v3107_v24, %v1526_v49  ;;  %v1628_v24 = vmul.f32 -10.0, %v1612_v29  ;;  %v1614_v49 = vmax.f32 %v1598_v20, 0.0  ;;  %3116 = vpow2.f32 %v1647_v59  ;;  %v3115_v59 = vpop.eup %3114 }
 0x467   :  { %v3002_v38 = vpop.f32.mrf.mxu0 }
 0x468   :  { %1717 = vrot.lane.b32.xlu1 %v1669_v55, %s3192_s2  ;;  %v1672_v50 = vmul.f32 %v3113_v58, %v3002_v38  ;;  %v687_v55 = vpop.xlane.xlu0 %686  ;;  %v1629_v38 = vmul.f32 -10.0, %v1613_v27  ;;  %v690_v58 = vpop.xlane.xlu1 %689  ;;  %v1630_v9 = vmul.f32 -10.0, %v1614_v49 }
 0x469   :  { %v1529_v52 = vpop.f32.mrf.mxu0  ;;  %v1602_v34 = vadd.f32 %v4748_v16, %v687_v55  ;;  %v1603_v57 = vadd.f32 %v4749_v8, %v690_v58 }
 0x46a   :  { %v1670_v15 = vmul.f32 %v3109_v35, %v1529_v52  ;;  %v4746_v35 = vld [vmem:[#allocation11_spill] sm:$0xff]  ;;  %v4747_v52 = vld [vmem:[#allocation12_spill] sm:$0xff]  ;;  %v1653_v5 = vmul.f32 1.442695, %v1629_v38  ;;  %v1655_v22 = vmul.f32 1.442695, %v1630_v9 }
 0x46b   :  { %v1601_v28 = vadd.f32 %v4746_v35, %v684_v41  ;;  %v1618_v40 = vmax.f32 %v1602_v34, 0.0  ;;  %v1619_v29 = vmax.f32 %v1603_v57, 0.0  ;;  %vm1696_vm10 = vcmp.lt.f32.partialorder %v4747_v52, inf }
 0x46c   :  { %1721 = vrot.lane.b32.xlu1 %v1671_v45, %s3192_s2  ;;  %1719 = vrot.lane.b32.xlu0 %v1670_v15, %s3192_s2  ;;  %v1600_v45 = vadd.f32 %v4747_v52, %v681_v19  ;;  %v1649_v15 = vmul.f32 1.442695, %v1627_v42  ;;  %v693_v21 = vpop.xlane.xlu0 %692  ;;  %vm1697_vm13 = vcmp.lt.f32.partialorder %v4746_v35, inf }
 0x46d   :  { %v1617_v44 = vmax.f32 %v1601_v28, 0.0  ;;  %v1604_v19 = vadd.f32 %v4750_v53, %v693_v21  ;;  %v1634_v20 = vmul.f32 -10.0, %v1618_v40  ;;  %v1635_v46 = vmul.f32 -10.0, %v1619_v29 }
 0x46e   :  { %v1616_v37 = vmax.f32 %v1600_v45, 0.0  ;;  %3118 = vpow2.f32 %v1649_v15 }
 0x46f   :  { %v1633_v31 = vmul.f32 -10.0, %v1617_v44  ;;  %v1620_v42 = vmax.f32 %v1604_v19, 0.0  ;;  %v1663_v38 = vmul.f32 1.442695, %v1634_v20  ;;  %v1665_v15 = vmul.f32 1.442695, %v1635_v46 }
 0x470   :  { %1723 = vrot.lane.b32.xlu1 %v1672_v50, %s3192_s2  ;;  %v1651_v50 = vmul.f32 1.442695, %v1628_v24  ;;  %v1632_v36 = vmul.f32 -10.0, %v1616_v37 }
 0x471   :  { %v1661_v27 = vmul.f32 1.442695, %v1633_v31  ;;  %v1636_v45 = vmul.f32 -10.0, %v1620_v42 }
 0x472   :  { %3120 = vpow2.f32 %v1651_v50  ;;  %v1659_v39 = vmul.f32 1.442695, %v1632_v36 }
 0x473   :  { %3122 = vpow2.f32 %v1653_v5  ;;  %v3117_v55 = vpop.eup %3116  ;;  %v1667_v37 = vmul.f32 1.442695, %v1636_v45 }
 0x474   :  { %3124 = vpow2.f32 %v1655_v22 }
 0x475   :  { %3126 = vpow2.f32 %v1657_v10 }
 0x476   :  { %3128 = vpow2.f32 %v1661_v27 }
 0x477   :  { %3130 = vpow2.f32 %v1659_v39 }
 0x478   :  { %3132 = vpow2.f32 %v1663_v38 }
 0x479   :  { %3134 = vpow2.f32 %v1665_v15  ;;  %v4751_v15 = vmov 0.0  }
 0x47a   :  { %3136 = vpow2.f32 %v1667_v37  ;;  %v2638_v37 = vsel %vm1686_vm5, 1.0, %v4751_v15 }
 0x47b   :  { %v3119_v1 = vpop.eup %3118 }
 0x47f   :  { %v3121_v5 = vpop.eup %3120 }
 0x480   :  { %v3123_v44 = vpop.eup %3122 }
 0x481   :  { %v3125_v40 = vpop.eup %3124 }
 0x482   :  { %v3127_v36 = vpop.eup %3126 }
 0x483   :  { %v3129_v20 = vpop.eup %3128 }
 0x493   :  { %v3005_v41 = vpop.f32.mrf.mxu0 }
 0x494   :  { %v1675_v50 = vmul.f32 %v3119_v1, %v3005_v41  ;;  %v3131_v41 = vpop.eup %3130  ;;  %v2639_v1 = vsel %vm1687_vm15, 1.0, %v4751_v15 }
 0x495   :  { %v1542_v24 = vpop.f32.mrf.mxu0 }
 0x496   :  { %v1673_v49 = vmul.f32 %v3115_v59, %v1542_v24  ;;  %v3133_v59 = vpop.eup %3132 }
 0x497   :  { %v3006_v28 = vpop.f32.mrf.mxu0 }
 0x498   :  { %1725 = vrot.lane.b32.xlu0 %v1673_v49, %s3192_s2  ;;  %v1676_v21 = vmul.f32 %v3121_v5, %v3006_v28  ;;  %v3135_v49 = vpop.eup %3134 }
 0x499   :  { %v1545_v58 = vpop.f32.mrf.mxu0  ;;  %v3137_v28 = vpop.eup %3136 }
 0x49a   :  { %v1674_v9 = vmul.f32 %v3117_v55, %v1545_v58  ;;  %v1863_v58 = vadd.f32 1.0, %v2639_v1 }
 0x49b   :  { %v3009_v34 = vpop.f32.mrf.mxu1 }
 0x49c   :  { %1729 = vrot.lane.b32.xlu0 %v1675_v50, %s3192_s2  ;;  %1727 = vrot.lane.b32.xlu1 %v1674_v9, %s3192_s2  ;;  %v1679_v10 = vmul.f32 %v3127_v36, %v3009_v34  ;;  %v2640_v50 = vsel %vm1688_vm2, 1.0, %v4751_v15  ;;  %3138 = vrcp.f32 %v1863_v58  ;;  %v2637_v34 = vsel %vm1685_vm4, 1.0, %v4751_v15 }
 0x49d   :  { %v1558_v0 = vpop.f32.mrf.mxu1  ;;  %v1864_v9 = vadd.f32 1.0, %v2640_v50  ;;  %v1861_v5 = vadd.f32 1.0, %v2637_v34  ;;  %v2641_v50 = vsel %vm1689_vm7, 1.0, %v4751_v15 }
 0x49e   :  { %v1677_v57 = vmul.f32 %v3123_v44, %v1558_v0  ;;  %v1862_v0 = vadd.f32 1.0, %v2638_v37 }
 0x49f   :  { %v3010_v22 = vpop.f32.mrf.mxu1  ;;  %3140 = vrcp.f32 %v1864_v9  ;;  %v1865_v9 = vadd.f32 1.0, %v2641_v50 }
 0x4a0   :  { %1733 = vrot.lane.b32.xlu0 %v1677_v57, %s3192_s2  ;;  %1731 = vrot.lane.b32.xlu1 %v1676_v21, %s3192_s2  ;;  %v1680_v42 = vmul.f32 %v3131_v41, %v3010_v22  ;;  %3142 = vrcp.f32 %v1861_v5  ;;  %v627_v21 = vld [vmem:[%s4687_s5 + $0x20] sm:$0x7f]  ;;  %v626_v22 = vld [vmem:[%s4687_s5 + $0x18] sm:$0xff]  ;;  %v2642_v5 = vsel %vm1690_vm8, 1.0, %v4751_v15 }
 0x4a1   :  { %v1561_v31 = vpop.f32.mrf.mxu1  ;;  %3015 = vmatprep.subr.msk.mxu1 %vm111_vm0, %v627_v21  ;;  %3144 = vrcp.f32 %v1862_v0 }
 0x4a2   :  { %v1678_v19 = vmul.f32 %v3125_v40, %v1561_v31  ;;  %3016 = vmatpush3.msk.msra.mxu1 %vm111_vm0, %v627_v21 }
 0x4a3   :  { %v3013_v29 = vpop.f32.mrf.mxu1  ;;  %3017 = vmatprep.subr.mxu1 %v626_v22 }
 0x4a4   :  { %1737 = vrot.lane.b32.xlu0 %v1679_v10, %s3192_s2  ;;  %1735 = vrot.lane.b32.xlu1 %v1678_v19, %s3192_s2  ;;  %v1683_v38 = vmul.f32 %v3135_v49, %v3013_v29  ;;  %v625_v19 = vld [vmem:[%s4687_s5 + $0x10] sm:$0xff]  ;;  %v624_v29 = vld [vmem:[%s4687_s5 + $0x8] sm:$0xff] }
 0x4a5   :  { %v1574_v27 = vpop.f32.mrf.mxu1  ;;  %3018 = vmatpush3.msra.mxu1 %v626_v22 }
 0x4a6   :  { %v1681_v39 = vmul.f32 %v3129_v20, %v1574_v27  ;;  %3019 = vmatprep.subr.mxu1 %v625_v19 }
 0x4a7   :  { %v3014_v46 = vpop.f32.mrf.mxu1  ;;  %3020 = vmatpush3.msra.mxu1 %v625_v19 }
 0x4a8   :  { %1741 = vrot.lane.b32.xlu0 %v1681_v39, %s3192_s2  ;;  %1739 = vrot.lane.b32.xlu1 %v1680_v42, %s3192_s2  ;;  %v1684_v45 = vmul.f32 %v3137_v28, %v3014_v46  ;;  %v623_v46 = vld [vmem:[%s4687_s5] sm:$0xff] }
 0x4a9   :  { %v1577_v24 = vpop.f32.mrf.mxu1  ;;  %v3139_v20 = vpop.eup %3138  ;;  %3021 = vmatprep.subr.mxu1 %v624_v29 }
 0x4aa   :  { %v1682_v55 = vmul.f32 %v3133_v59, %v1577_v24  ;;  %3022 = vmatpush3.msra.mxu1 %v624_v29 }
 0x4ab   :  { %3023 = vmatprep.subr.mxu1 %v623_v46 }
 0x4ac   :  { %1745 = vrot.lane.b32.xlu0 %v1683_v38, %s3192_s2  ;;  %1743 = vrot.lane.b32.xlu1 %v1682_v55, %s3192_s2  ;;  %v3141_v59 = vpop.eup %3140 }
 0x4ad   :  { %3024 = vmatpush3.msra.mxu1 %v623_v46  ;;  %v3143_v55 = vpop.eup %3142 }
 0x4ae   :  { %v3145_v1 = vpop.eup %3144 }
 0x4b0   :  { %1747 = vrot.lane.b32.xlu1 %v1684_v45, %s3192_s2 }
 0x4da   :  { %v1718_v44 = vpop.permute.xlu1 %1717 }
 0x4db   :  { %v1781_v41 = vmax.f32 %v3411_v47, %v1718_v44  ;;  %v1765_v24 = vadd.f32 %v1718_v44, %v3411_v47  ;;  %v1866_v44 = vadd.f32 1.0, %v2642_v5 }
 0x4dd   :  { %v1909_v38 = vmul.f32 %v3143_v55, %v1765_v24 }
 0x4de   :  { %v1722_v57 = vpop.permute.xlu1 %1721  ;;  %v1720_v42 = vpop.permute.xlu0 %1719 }
 0x4df   :  { %v1783_v40 = vmax.f32 %v3543_v48, %v1722_v57  ;;  %v1767_v31 = vadd.f32 %v1722_v57, %v3543_v48  ;;  %v1782_v54 = vmax.f32 %v3405_v43, %v1720_v42  ;;  %v1766_v28 = vadd.f32 %v1720_v42, %v3405_v43 }
 0x4e0   :  { %v2647_v57 = vsel %vm1695_vm9, 1.0, %v4751_v15 }
 0x4e1   :  { %v1831_v36 = vsel %vm1687_vm15, %v1783_v40, %v3543_v48  ;;  %v1911_v48 = vmul.f32 %v3139_v20, %v1767_v31  ;;  %v1830_v45 = vsel %vm1686_vm5, %v1782_v54, %v3405_v43  ;;  %v1910_v26 = vmul.f32 %v3145_v1, %v1766_v28 }
 0x4e2   :  { %v1724_v10 = vpop.permute.xlu1 %1723  ;;  %2009 = vrot.lane.b32.xlu0 %v1831_v36, %s3193_s28  ;;  %v2644_v43 = vsel %vm1692_vm6, 1.0, %v4751_v15  ;;  %v1871_v31 = vadd.f32 1.0, %v2647_v57  ;;  %vm1698_vm15 = vcmp.lt.f32.partialorder %v4748_v16, inf  ;;  %vm2069_vm5 = vcmask 252928  }
 0x4e3   :  { %v1784_v27 = vmax.f32 %v3547_v51, %v1724_v10  ;;  %v1768_v30 = vadd.f32 %v1724_v10, %v3547_v51  ;;  %v1868_v23 = vadd.f32 1.0, %v2644_v43  ;;  %v2648_v10 = vsel %vm1696_vm10, 1.0, %v4751_v15 }
 0x4e5   :  { %v1832_v39 = vsel %vm1688_vm2, %v1784_v27, %v3547_v51  ;;  %v1912_v49 = vmul.f32 %v3141_v59, %v1768_v30  ;;  %v1829_v51 = vsel %vm1685_vm4, %v1781_v41, %v3411_v47  ;;  %v2643_v47 = vsel %vm1691_vm3, 1.0, %v4751_v15 }
 0x4e6   :  { %1945 = vrot.lane.b32.xlu0 %v1911_v48, %s3194_s11  ;;  %2011 = vrot.lane.b32.xlu1 %v1832_v39, %s3193_s28  ;;  %v1867_v58 = vadd.f32 1.0, %v2643_v47  ;;  %v1872_v30 = vadd.f32 1.0, %v2648_v10  ;;  %v2645_v39 = vsel %vm1693_vm11, 1.0, %v4751_v15  ;;  %vm1700_vm2 = vcmp.lt.f32.partialorder %v4750_v53, inf }
 0x4e7   :  { %v1869_v24 = vadd.f32 1.0, %v2645_v39  ;;  %v2652_v57 = vsel %vm1700_vm2, 1.0, %v4751_v15  ;;  %vm2092_vm4 = vcmask 318464  }
 0x4e8   :  { %3146 = vrcp.f32 %v1867_v58 }
 0x4e9   :  { %3148 = vrcp.f32 %v1868_v23  ;;  %v2651_v23 = vsel %vm1699_vm14, 1.0, %v4751_v15 }
 0x4ea   :  { %2005 = vrot.lane.b32.xlu0 %v1829_v51, %s3193_s28  ;;  %1947 = vrot.lane.b32.xlu1 %v1912_v49, %s3194_s11  ;;  %3150 = vrcp.f32 %v1865_v9  ;;  %v2646_v51 = vsel %vm1694_vm12, 1.0, %v4751_v15  ;;  %v2650_v9 = vsel %vm1698_vm15, 1.0, %v4751_v15  ;;  %v1875_v33 = vadd.f32 1.0, %v2651_v23 }
 0x4eb   :  { %3152 = vrcp.f32 %v1866_v44  ;;  %v1870_v28 = vadd.f32 1.0, %v2646_v51 }
 0x4ec   :  { %3154 = vrcp.f32 %v1871_v31 }
 0x4ed   :  { %3156 = vrcp.f32 %v1872_v30 }
 0x4ee   :  { %1941 = vrot.lane.b32.xlu0 %v1909_v38, %s3194_s11  ;;  %2007 = vrot.lane.b32.xlu1 %v1830_v45, %s3193_s28  ;;  %3158 = vrcp.f32 %v1869_v24 }
 0x4ef   :  { %3160 = vrcp.f32 %v1870_v28 }
 0x4f2   :  { %1943 = vrot.lane.b32.xlu1 %v1910_v26, %s3194_s11  ;;  %v2649_v26 = vsel %vm1697_vm13, 1.0, %v4751_v15 }
 0x4f3   :  { %v1873_v43 = vadd.f32 1.0, %v2649_v26 }
 0x4f5   :  { %v3147_v19 = vpop.eup %3146  ;;  %3162 = vrcp.f32 %v1873_v43 }
 0x4f6   :  { %v3149_v41 = vpop.eup %3148  ;;  %3164 = vrcp.f32 %v1875_v33 }
 0x4f7   :  { %v3151_v54 = vpop.eup %3150 }
 0x4f8   :  { %v3153_v1 = vpop.eup %3152 }
 0x4f9   :  { %v3155_v50 = vpop.eup %3154 }
 0x50a   :  { %v1726_v34 = vpop.permute.xlu0 %1725 }
 0x50b   :  { %v1769_v42 = vadd.f32 %v1726_v34, %v3555_v56 }
 0x50d   :  { %v1913_v55 = vmul.f32 %v3151_v54, %v1769_v42 }
 0x50e   :  { %v1730_v37 = vpop.permute.xlu0 %1729  ;;  %v1728_v0 = vpop.permute.xlu1 %1727 }
 0x50f   :  { %v1787_v21 = vmax.f32 %v3567_v63, %v1730_v37  ;;  %v1771_v22 = vadd.f32 %v1730_v37, %v3567_v63  ;;  %v1770_v38 = vadd.f32 %v1728_v0, %v3560_v62  ;;  %v1874_v37 = vadd.f32 1.0, %v2650_v9 }
 0x511   :  { %v1835_v40 = vsel %vm1691_vm3, %v1787_v21, %v3567_v63  ;;  %v1915_v20 = vmul.f32 %v3147_v19, %v1771_v22  ;;  %v1785_v63 = vmax.f32 %v3555_v56, %v1726_v34  ;;  %v1914_v47 = vmul.f32 %v3153_v1, %v1770_v38 }
 0x512   :  { %2017 = vrot.lane.b32.xlu0 %v1835_v40, %s3193_s28  ;;  %v1732_v36 = vpop.permute.xlu1 %1731  ;;  %v4317_v27 = vpop.permute.xlu0 %1733  ;;  %3166 = vrcp.f32 %v1874_v37  ;;  %v1876_v40 = vadd.f32 1.0, %v2652_v57 }
 0x513   :  { %v1788_v29 = vmax.f32 %v3572_v2, %v1732_v36  ;;  %v1772_v13 = vadd.f32 %v1732_v36, %v3572_v2  ;;  %v1833_v61 = vsel %vm1689_vm7, %v1785_v63, %v3555_v56  ;;  %v1789_v5 = vmax.f32 %v3581_v4, %v4317_v27 }
 0x514   :  { %v1773_v21 = vadd.f32 %v4317_v27, %v3581_v4  ;;  %3168 = vrcp.f32 %v1876_v40 }
 0x515   :  { %v1836_v48 = vsel %vm1692_vm6, %v1788_v29, %v3572_v2  ;;  %v1916_v46 = vmul.f32 %v3149_v41, %v1772_v13  ;;  %v1786_v2 = vmax.f32 %v3560_v62, %v1728_v0  ;;  %v3157_v0 = vpop.eup %3156 }
 0x516   :  { %1953 = vrot.lane.b32.xlu0 %v1915_v20, %s3194_s11  ;;  %2019 = vrot.lane.b32.xlu1 %v1836_v48, %s3193_s28  ;;  %v4331_v59 = vpop.permute.xlu1 %1735  ;;  %v1738_v49 = vpop.permute.xlu0 %1737 }
 0x517   :  { %v1791_v3 = vmax.f32 %v3591_v7, %v1738_v49  ;;  %v1834_v56 = vsel %vm1690_vm8, %v1786_v2, %v3560_v62  ;;  %v1775_v60 = vadd.f32 %v1738_v49, %v3591_v7  ;;  %v1790_v52 = vmax.f32 %v3584_v6, %v4331_v59  ;;  %v3159_v15 = vpop.eup %3158 }
 0x518   :  { %v1917_v36 = vmul.f32 %v3159_v15, %v1773_v21  ;;  %v1774_v19 = vadd.f32 %v4331_v59, %v3584_v6  ;;  %v3161_v25 = vpop.eup %3160 }
 0x519   :  { %v1839_v58 = vsel %vm1695_vm9, %v1791_v3, %v3591_v7  ;;  %v1919_v34 = vmul.f32 %v3155_v50, %v1775_v60  ;;  %v1838_v29 = vsel %vm1694_vm12, %v1790_v52, %v3584_v6  ;;  %v3163_v6 = vpop.eup %3162 }
 0x51a   :  { %2013 = vrot.lane.b32.xlu0 %v1833_v61, %s3193_s28  ;;  %1955 = vrot.lane.b32.xlu1 %v1916_v46, %s3194_s11  ;;  %v1740_v45 = vpop.permute.xlu1 %1739  ;;  %v1742_v31 = vpop.permute.xlu0 %1741  ;;  %v1918_v20 = vmul.f32 %v3161_v25, %v1774_v19  ;;  %v3177_v19 = vld [vmem:[%s4683_s0 + $0x38] sm:$0xff] }
 0x51b   :  { %v1792_v62 = vmax.f32 %v3598_v11, %v1740_v45  ;;  %v1776_v7 = vadd.f32 %v1740_v45, %v3598_v11  ;;  %v1793_v10 = vmax.f32 %v3605_v12, %v1742_v31  ;;  %v1777_v27 = vadd.f32 %v1742_v31, %v3605_v12  ;;  %v3165_v46 = vpop.eup %3164  ;;  %v3176_v31 = vld [vmem:[%s4683_s0 + $0x28] sm:$0xff] }
 0x51d   :  { %v1840_v44 = vsel %vm1696_vm10, %v1792_v62, %v3598_v11  ;;  %v1920_v22 = vmul.f32 %v3157_v0, %v1776_v7  ;;  %v1837_v11 = vsel %vm1693_vm11, %v1789_v5, %v3581_v4  ;;  %v1841_v48 = vsel %vm1697_vm13, %v1793_v10, %v3605_v12  ;;  %v3174_v0 = vld [vmem:[%s4683_s0 + $0x20] sm:$0xff] }
 0x51e   :  { %1949 = vrot.lane.b32.xlu0 %v1913_v55, %s3194_s11  ;;  %2015 = vrot.lane.b32.xlu1 %v1834_v56, %s3193_s28  ;;  %v1744_v4 = vpop.permute.xlu1 %1743  ;;  %v1746_v13 = vpop.permute.xlu0 %1745  ;;  %v1921_v32 = vmul.f32 %v3163_v6, %v1777_v27  ;;  %v3178_v6 = vld [vmem:[%s4683_s0 + $0x40] sm:$0xff] }
 0x51f   :  { %v1794_v63 = vmax.f32 %v3608_v14, %v1744_v4  ;;  %v1779_v30 = vadd.f32 %v1746_v13, %v3619_v17  ;;  %v1778_v41 = vadd.f32 %v1744_v4, %v3608_v14  ;;  %v3167_v12 = vpop.eup %3166  ;;  %v1795_v61 = vmax.f32 %v3619_v17, %v1746_v13 }
 0x521   :  { %v1842_v42 = vsel %vm1698_vm15, %v1794_v63, %v3608_v14  ;;  %v1923_v35 = vmul.f32 %v3165_v46, %v1779_v30  ;;  %v1922_v59 = vmul.f32 %v3167_v12, %v1778_v41  ;;  %v3169_v24 = vpop.eup %3168  ;;  %v1843_v16 = vsel %vm1699_vm14, %v1795_v61, %v3619_v17  ;;  %v3170_v17 = vld [vmem:[%s4683_s0] sm:$0xff]  ;;  %v3179_v41 = vld [vmem:[%s4683_s0 + $0x50] sm:$0xff]  ;;  %v3180_v12 = vld [vmem:[%s4683_s0 + $0x48] sm:$0xff] }
 0x522   :  { %2025 = vrot.lane.b32.xlu0 %v1839_v58, %s3193_s28  ;;  %1951 = vrot.lane.b32.xlu1 %v1914_v47, %s3194_s11  ;;  %v1748_v39 = vpop.permute.xlu1 %1747  ;;  %v3172_v47 = vld [vmem:[%s4683_s0 + $0x8] sm:$0xff]  ;;  %v3173_v58 = vld [vmem:[%s4683_s0 + $0x18] sm:$0xff] }
 0x523   :  { %v1780_v2 = vadd.f32 %v1748_v39, %v3622_v18  ;;  %v1796_v14 = vmax.f32 %v3622_v18, %v1748_v39 }
 0x525   :  { %v1924_v49 = vmul.f32 %v3169_v24, %v1780_v2  ;;  %v1844_v54 = vsel %vm1700_vm2, %v1796_v14, %v3622_v18  ;;  %v3171_v18 = vld [vmem:[%s4683_s0 + $0x10] sm:$0xff]  ;;  %v3181_v2 = vld [vmem:[%s4683_s0 + $0x58] sm:$0xff] }
 0x526   :  { %1961 = vrot.lane.b32.xlu0 %v1919_v34, %s3194_s11  ;;  %2027 = vrot.lane.b32.xlu1 %v1840_v44, %s3193_s28 }
 0x52a   :  { %2021 = vrot.lane.b32.xlu0 %v1837_v11, %s3193_s28  ;;  %1963 = vrot.lane.b32.xlu1 %v1920_v22, %s3194_s11  ;;  %v3175_v22 = vld [vmem:[%s4683_s0 + $0x30] sm:$0xff] }
 0x52e   :  { %1957 = vrot.lane.b32.xlu0 %v1917_v36, %s3194_s11  ;;  %2023 = vrot.lane.b32.xlu1 %v1838_v29, %s3193_s28 }
 0x532   :  { %2029 = vrot.lane.b32.xlu0 %v1841_v48, %s3193_s28  ;;  %1959 = vrot.lane.b32.xlu1 %v1918_v20, %s3194_s11 }
 0x536   :  { %1965 = vrot.lane.b32.xlu0 %v1921_v32, %s3194_s11  ;;  %2031 = vrot.lane.b32.xlu1 %v1842_v42, %s3193_s28 }
 0x53a   :  { %1969 = vrot.lane.b32.xlu0 %v1923_v35, %s3194_s11  ;;  %1967 = vrot.lane.b32.xlu1 %v1922_v59, %s3194_s11 }
 0x53e   :  { %2033 = vrot.lane.b32.xlu0 %v1843_v16, %s3193_s28  ;;  %1971 = vrot.lane.b32.xlu1 %v1924_v49, %s3194_s11  ;;  %v3182_v16 = vld [vmem:[%s4683_s0 + $0x60] sm:$0xff] }
 0x542   :  { %2035 = vrot.lane.b32.xlu1 %v1844_v54, %s3193_s28 }
 0x554   :  { %v2010_v51 = vpop.permute.xlu0 %2009 }
 0x558   :  { %v1946_v55 = vpop.permute.xlu0 %1945  ;;  %v2012_v38 = vpop.permute.xlu1 %2011 }
 0x559   :  { %v2055_v1 = vsel %vm62_vm1, %v3171_v18, %v1946_v55  ;;  %v3184_v18 = vld [vmem:[%s4683_s0 + $0x70] sm:$0xff] }
 0x55a   :  { %v2072_v23 = vsel %vm2069_vm5, %v2055_v1, %v2010_v51 }
 0x55c   :  { %v2006_v3 = vpop.permute.xlu0 %2005  ;;  %v1948_v56 = vpop.permute.xlu1 %1947 }
 0x55d   :  { %v2056_v43 = vsel %vm62_vm1, %v3173_v58, %v1948_v56 }
 0x55e   :  { %v2073_v50 = vsel %vm2069_vm5, %v2056_v43, %v2012_v38  ;;  %v2307_v38 = vld [vmem:[%s4688_s7 + $0x10] sm:$0x7f] }
 0x55f   :  { %3049 = vmatprep.subr.msk.mxu0 %vm111_vm0, %v2307_v38 }
 0x560   :  { %v1942_v28 = vpop.permute.xlu0 %1941  ;;  %v2008_v45 = vpop.permute.xlu1 %2007  ;;  %3050 = vmatpush3.msk.msra.mxu0 %vm111_vm0, %v2307_v38  ;;  %vm2511_vm0 = vcmask 130048  }
 0x561   :  { %v2053_v8 = vsel %vm62_vm1, %v3170_v17, %v1942_v28  ;;  %v2306_v28 = vld [vmem:[%s4688_s7 + $0x8] sm:$0xff] }
 0x562   :  { %v2070_v53 = vsel %vm2069_vm5, %v2053_v8, %v2006_v3  ;;  %3051 = vmatprep.subr.mxu0 %v2306_v28 }
 0x563   :  { %3025 = vmatprep.mubr.msk.f32.mxu1 %vm2092_vm4, %v2070_v53  ;;  %v2305_v53 = vld [vmem:[%s4688_s7] sm:$0xff]  ;;  %3052 = vmatpush3.msra.mxu0 %v2306_v28 }
 0x564   :  { %v1944_v26 = vpop.permute.xlu1 %1943  ;;  %3053 = vmatprep.subr.mxu0 %v2305_v53 }
 0x565   :  { %v2054_v60 = vsel %vm62_vm1, %v3172_v47, %v1944_v26  ;;  %3054 = vmatpush3.msra.mxu0 %v2305_v53 }
 0x566   :  { %v2071_v62 = vsel %vm2069_vm5, %v2054_v60, %v2008_v45  ;;  %v3183_v45 = vld [vmem:[%s4683_s0 + $0x68] sm:$0xff] }
 0x567   :  { %3026 = vmatmul.mubr.msk.f32.vlgmr.msra.gmra.mxu1 %vm2092_vm4, %v2071_v62  ;;  %v3185_v62 = vld [vmem:[%s4683_s0 + $0x78] sm:$0xff] }
 0x568   :  { %3028 = vmatprep.mubr.msk.f32.mxu1 %vm2092_vm4, %v2072_v23 }
 0x56b   :  { %3029 = vmatmul.mubr.msk.f32.gmra.mxu1 %vm2092_vm4, %v2073_v50  ;;  %v2653_v50 = vld [vmem:[%s4689_s6] ss:$0 sm:$0xff] }
 0x584   :  { %v2018_v9 = vpop.permute.xlu0 %2017 }
 0x588   :  { %v1954_v34 = vpop.permute.xlu0 %1953  ;;  %v2020_v7 = vpop.permute.xlu1 %2019 }
 0x589   :  { %v2059_v52 = vsel %vm62_vm1, %v3175_v22, %v1954_v34 }
 0x58a   :  { %v2076_v29 = vsel %vm2069_vm5, %v2059_v52, %v2018_v9 }
 0x58c   :  { %v2014_v33 = vpop.permute.xlu0 %2013  ;;  %v1956_v5 = vpop.permute.xlu1 %1955 }
 0x58d   :  { %v2060_v10 = vsel %vm62_vm1, %v3177_v19, %v1956_v5 }
 0x58e   :  { %v2077_v20 = vsel %vm2069_vm5, %v2060_v10, %v2020_v7 }
 0x590   :  { %v1950_v44 = vpop.permute.xlu0 %1949  ;;  %v2016_v37 = vpop.permute.xlu1 %2015 }
 0x591   :  { %v2057_v57 = vsel %vm62_vm1, %v3174_v0, %v1950_v44 }
 0x592   :  { %v2074_v21 = vsel %vm2069_vm5, %v2057_v57, %v2014_v33 }
 0x593   :  { %3031 = vmatprep.mubr.msk.f32.mxu1 %vm2092_vm4, %v2074_v21 }
 0x594   :  { %v2026_v11 = vpop.permute.xlu0 %2025  ;;  %v1952_v40 = vpop.permute.xlu1 %1951 }
 0x595   :  { %v2058_v15 = vsel %vm62_vm1, %v3176_v31, %v1952_v40 }
 0x596   :  { %v2075_v36 = vsel %vm2069_vm5, %v2058_v15, %v2016_v37 }
 0x597   :  { %3032 = vmatmul.mubr.msk.f32.gmra.mxu1 %vm2092_vm4, %v2075_v36 }
 0x598   :  { %v1962_v4 = vpop.permute.xlu0 %1961  ;;  %3034 = vmatprep.mubr.msk.f32.mxu1 %vm2092_vm4, %v2076_v29  ;;  %v2028_v25 = vpop.permute.xlu1 %2027 }
 0x599   :  { %v2063_v39 = vsel %vm62_vm1, %v3179_v41, %v1962_v4 }
 0x59a   :  { %v2080_v24 = vsel %vm2069_vm5, %v2063_v39, %v2026_v11 }
 0x59b   :  { %3035 = vmatmul.mubr.msk.f32.gmra.mxu1 %vm2092_vm4, %v2077_v20 }
 0x59c   :  { %v2022_v27 = vpop.permute.xlu0 %2021  ;;  %v1964_v13 = vpop.permute.xlu1 %1963 }
 0x59d   :  { %v2064_v61 = vsel %vm62_vm1, %v3181_v2, %v1964_v13 }
 0x59e   :  { %v2081_v51 = vsel %vm2069_vm5, %v2064_v61, %v2028_v25 }
 0x5a0   :  { %v1958_v63 = vpop.permute.xlu0 %1957  ;;  %v2024_v48 = vpop.permute.xlu1 %2023 }
 0x5a1   :  { %v2061_v32 = vsel %vm62_vm1, %v3178_v6, %v1958_v63 }
 0x5a2   :  { %v2078_v30 = vsel %vm2069_vm5, %v2061_v32, %v2022_v27 }
 0x5a3   :  { %3037 = vmatprep.mubr.msk.f32.mxu1 %vm2092_vm4, %v2078_v30 }
 0x5a4   :  { %v2030_v42 = vpop.permute.xlu0 %2029  ;;  %v1960_v46 = vpop.permute.xlu1 %1959 }
 0x5a5   :  { %v2062_v35 = vsel %vm62_vm1, %v3180_v12, %v1960_v46 }
 0x5a6   :  { %v2079_v59 = vsel %vm2069_vm5, %v2062_v35, %v2024_v48 }
 0x5a7   :  { %3038 = vmatmul.mubr.msk.f32.gmra.mxu1 %vm2092_vm4, %v2079_v59 }
 0x5a8   :  { %v1966_v49 = vpop.permute.xlu0 %1965  ;;  %3040 = vmatprep.mubr.msk.f32.mxu1 %vm2092_vm4, %v2080_v24  ;;  %v2032_v14 = vpop.permute.xlu1 %2031 }
 0x5a9   :  { %v2065_v54 = vsel %vm62_vm1, %v3182_v16, %v1966_v49 }
 0x5aa   :  { %v2082_v55 = vsel %vm2069_vm5, %v2065_v54, %v2030_v42  ;;  %v2671_v42 = vld [vmem:[%s4691_s8] ss:$0 sm:$0xff] }
 0x5ab   :  { %3041 = vmatmul.mubr.msk.f32.gmra.mxu1 %vm2092_vm4, %v2081_v51 }
 0x5ac   :  { %v1970_v3 = vpop.permute.xlu0 %1969  ;;  %3043 = vmatprep.mubr.msk.f32.mxu1 %vm2092_vm4, %v2082_v55  ;;  %v1968_v56 = vpop.permute.xlu1 %1967 }
 0x5ad   :  { %v2066_v17 = vsel %vm62_vm1, %v3183_v45, %v1968_v56  ;;  %v2067_v1 = vsel %vm62_vm1, %v3184_v18, %v1970_v3 }
 0x5ae   :  { %v2083_v8 = vsel %vm2069_vm5, %v2066_v17, %v2032_v14 }
 0x5af   :  { %3044 = vmatmul.mubr.msk.f32.gmra.mxu1 %vm2092_vm4, %v2083_v8 }
 0x5b0   :  { %v2034_v26 = vpop.permute.xlu0 %2033  ;;  %v1972_v47 = vpop.permute.xlu1 %1971 }
 0x5b1   :  { %v2084_v60 = vsel %vm2069_vm5, %v2067_v1, %v2034_v26  ;;  %v2068_v58 = vsel %vm62_vm1, %v3185_v62, %v1972_v47 }
 0x5b2   :  { %3046 = vmatprep.mubr.msk.f32.mxu1 %vm2092_vm4, %v2084_v60 }
 0x5b4   :  { %v2036_v43 = vpop.permute.xlu1 %2035 }
 0x5b5   :  { %v2085_v23 = vsel %vm2069_vm5, %v2068_v58, %v2036_v43 }
 0x5b6   :  { %3047 = vmatmul.mubr.msk.f32.gmra.mxu1 %vm2092_vm4, %v2085_v23 }
 0x627   :  { %v3027_v9 = vpop.f32.mrf.mxu1 }
 0x628   :  { %v2216_v34 = vadd.f32 %v3027_v9, %v2653_v50 }
 0x629   :  { %v2210_v7 = vpop.f32.mrf.mxu1 }
 0x62a   :  { %2290 = vst.msk [vmem:[%s4690_s9 + $0x8] sm:$0xff] %vm62_vm1, %v2216_v34  ;;  %v2211_v33 = vadd.f32 %v2653_v50, %v2210_v7 }
 0x62b   :  { %v3030_v5 = vpop.f32.mrf.mxu1 }
 0x62c   :  { %2289 = vst.msk [vmem:[%s4690_s9] sm:$0xff] %vm62_vm1, %v2211_v33  ;;  %v2226_v44 = vadd.f32 %v3030_v5, %v2653_v50  ;;  %3055 = vmatprep.mubr.msk.f32.mxu0 %vm62_vm1, %v2211_v33 }
 0x62d   :  { %v2220_v37 = vpop.f32.mrf.mxu1  ;;  %3056 = vmatmul.mubr.msk.f32.vlgmr.msra.gmra.mxu0 %vm62_vm1, %v2216_v34 }
 0x62e   :  { %2292 = vst.msk [vmem:[%s4690_s9 + $0x18] sm:$0xff] %vm62_vm1, %v2226_v44  ;;  %v2221_v0 = vadd.f32 %v2653_v50, %v2220_v37 }
 0x630   :  { %2291 = vst.msk [vmem:[%s4690_s9 + $0x10] sm:$0xff] %vm62_vm1, %v2221_v0  ;;  %3058 = vmatprep.mubr.msk.f32.mxu0 %vm62_vm1, %v2221_v0 }
 0x631   :  { %3059 = vmatmul.mubr.msk.f32.gmra.mxu0 %vm62_vm1, %v2226_v44 }
 0x657   :  { %v3033_v57 = vpop.f32.mrf.mxu1 }
 0x658   :  { %v2236_v21 = vadd.f32 %v3033_v57, %v2653_v50 }
 0x659   :  { %v2230_v22 = vpop.f32.mrf.mxu1 }
 0x65a   :  { %2294 = vst.msk [vmem:[%s4690_s9 + $0x28] sm:$0xff] %vm62_vm1, %v2236_v21  ;;  %v2231_v52 = vadd.f32 %v2653_v50, %v2230_v22 }
 0x65b   :  { %v3036_v11 = vpop.f32.mrf.mxu1 }
 0x65c   :  { %2293 = vst.msk [vmem:[%s4690_s9 + $0x20] sm:$0xff] %vm62_vm1, %v2231_v52  ;;  %v2246_v40 = vadd.f32 %v3036_v11, %v2653_v50  ;;  %3061 = vmatprep.mubr.msk.f32.mxu0 %vm62_vm1, %v2231_v52 }
 0x65d   :  { %v2240_v31 = vpop.f32.mrf.mxu1  ;;  %3062 = vmatmul.mubr.msk.f32.gmra.mxu0 %vm62_vm1, %v2236_v21 }
 0x65e   :  { %2296 = vst.msk [vmem:[%s4690_s9 + $0x38] sm:$0xff] %vm62_vm1, %v2246_v40  ;;  %v2241_v15 = vadd.f32 %v2653_v50, %v2240_v31 }
 0x660   :  { %2295 = vst.msk [vmem:[%s4690_s9 + $0x30] sm:$0xff] %vm62_vm1, %v2241_v15  ;;  %3064 = vmatprep.mubr.msk.f32.mxu0 %vm62_vm1, %v2241_v15 }
 0x661   :  { %3065 = vmatmul.mubr.msk.f32.gmra.mxu0 %vm62_vm1, %v2246_v40 }
 0x667   :  { %v3039_v36 = vpop.f32.mrf.mxu1 }
 0x668   :  { %v2256_v19 = vadd.f32 %v3039_v36, %v2653_v50 }
 0x669   :  { %v2250_v10 = vpop.f32.mrf.mxu1 }
 0x66a   :  { %2298 = vst.msk [vmem:[%s4690_s9 + $0x48] sm:$0xff] %vm62_vm1, %v2256_v19  ;;  %v2251_v29 = vadd.f32 %v2653_v50, %v2250_v10 }
 0x66b   :  { %v3042_v4 = vpop.f32.mrf.mxu1 }
 0x66c   :  { %2297 = vst.msk [vmem:[%s4690_s9 + $0x40] sm:$0xff] %vm62_vm1, %v2251_v29  ;;  %v2266_v25 = vadd.f32 %v3042_v4, %v2653_v50  ;;  %3067 = vmatprep.mubr.msk.f32.mxu0 %vm62_vm1, %v2251_v29 }
 0x66d   :  { %v2260_v20 = vpop.f32.mrf.mxu1  ;;  %3068 = vmatmul.mubr.msk.f32.gmra.mxu0 %vm62_vm1, %v2256_v19 }
 0x66e   :  { %2300 = vst.msk [vmem:[%s4690_s9 + $0x58] sm:$0xff] %vm62_vm1, %v2266_v25  ;;  %v2261_v27 = vadd.f32 %v2653_v50, %v2260_v20 }
 0x66f   :  { %v3045_v13 = vpop.f32.mrf.mxu1 }
 0x670   :  { %2299 = vst.msk [vmem:[%s4690_s9 + $0x50] sm:$0xff] %vm62_vm1, %v2261_v27  ;;  %v2276_v63 = vadd.f32 %v3045_v13, %v2653_v50  ;;  %3070 = vmatprep.mubr.msk.f32.mxu0 %vm62_vm1, %v2261_v27 }
 0x671   :  { %v2270_v48 = vpop.f32.mrf.mxu1  ;;  %3071 = vmatmul.mubr.msk.f32.gmra.mxu0 %vm62_vm1, %v2266_v25 }
 0x672   :  { %2302 = vst.msk [vmem:[%s4690_s9 + $0x68] sm:$0xff] %vm62_vm1, %v2276_v63  ;;  %v2271_v6 = vadd.f32 %v2653_v50, %v2270_v48 }
 0x674   :  { %2301 = vst.msk [vmem:[%s4690_s9 + $0x60] sm:$0xff] %vm62_vm1, %v2271_v6  ;;  %3073 = vmatprep.mubr.msk.f32.mxu0 %vm62_vm1, %v2271_v6 }
 0x675   :  { %3074 = vmatmul.mubr.msk.f32.gmra.mxu0 %vm62_vm1, %v2276_v63 }
 0x676   :  { %v3048_v32 = vpop.f32.mrf.mxu1 }
 0x677   :  { %v2286_v30 = vadd.f32 %v3048_v32, %v2653_v50 }
 0x678   :  { %v2280_v41 = vpop.f32.mrf.mxu1 }
 0x679   :  { %2304 = vst.msk [vmem:[%s4690_s9 + $0x78] sm:$0xff] %vm62_vm1, %v2286_v30  ;;  %v2281_v39 = vadd.f32 %v2653_v50, %v2280_v41 }
 0x67b   :  { %2303 = vst.msk [vmem:[%s4690_s9 + $0x70] sm:$0xff] %vm62_vm1, %v2281_v39  ;;  %3076 = vmatprep.mubr.msk.f32.mxu0 %vm62_vm1, %v2281_v39 }
 0x67c   :  { %3077 = vmatmul.mubr.msk.f32.gmra.mxu0 %vm62_vm1, %v2286_v30 }
 0x6ed   :  { %v3057_v46 = vpop.f32.mrf.mxu0 }
 0x6ee   :  { %v2438_v12 = vadd.f32 %v3057_v46, %v2671_v42 }
 0x6ef   :  { %v2432_v35 = vpop.f32.mrf.mxu0 }
 0x6f0   :  { %2513 = vst.msk [vmem:[%s4692_s10 + $0x8] sm:$0xff] %vm2511_vm0, %v2438_v12  ;;  %v2433_v59 = vadd.f32 %v2671_v42, %v2432_v35 }
 0x6f1   :  { %v3060_v2 = vpop.f32.mrf.mxu0 }
 0x6f2   :  { %2512 = vst.msk [vmem:[%s4692_s10] sm:$0xff] %vm2511_vm0, %v2433_v59  ;;  %v2448_v61 = vadd.f32 %v3060_v2, %v2671_v42 }
 0x6f3   :  { %v2442_v24 = vpop.f32.mrf.mxu0 }
 0x6f4   :  { %2515 = vst.msk [vmem:[%s4692_s10 + $0x18] sm:$0xff] %vm2511_vm0, %v2448_v61  ;;  %v2443_v49 = vadd.f32 %v2671_v42, %v2442_v24 }
 0x6f6   :  { %2514 = vst.msk [vmem:[%s4692_s10 + $0x10] sm:$0xff] %vm2511_vm0, %v2443_v49 }
 0x71d   :  { %v3063_v14 = vpop.f32.mrf.mxu0 }
 0x71e   :  { %v2458_v16 = vadd.f32 %v3063_v14, %v2671_v42 }
 0x71f   :  { %v2452_v54 = vpop.f32.mrf.mxu0 }
 0x720   :  { %2517 = vst.msk [vmem:[%s4692_s10 + $0x28] sm:$0xff] %vm2511_vm0, %v2458_v16  ;;  %v2453_v51 = vadd.f32 %v2671_v42, %v2452_v54 }
 0x721   :  { %v3066_v55 = vpop.f32.mrf.mxu0 }
 0x722   :  { %2516 = vst.msk [vmem:[%s4692_s10 + $0x20] sm:$0xff] %vm2511_vm0, %v2453_v51  ;;  %v2468_v38 = vadd.f32 %v3066_v55, %v2671_v42 }
 0x723   :  { %v2462_v3 = vpop.f32.mrf.mxu0 }
 0x724   :  { %2519 = vst.msk [vmem:[%s4692_s10 + $0x38] sm:$0xff] %vm2511_vm0, %v2468_v38  ;;  %v2463_v56 = vadd.f32 %v2671_v42, %v2462_v3 }
 0x726   :  { %2518 = vst.msk [vmem:[%s4692_s10 + $0x30] sm:$0xff] %vm2511_vm0, %v2463_v56 }
 0x72d   :  { %v3069_v28 = vpop.f32.mrf.mxu0 }
 0x72e   :  { %v2478_v45 = vadd.f32 %v3069_v28, %v2671_v42 }
 0x72f   :  { %v2472_v17 = vpop.f32.mrf.mxu0 }
 0x730   :  { %2521 = vst.msk [vmem:[%s4692_s10 + $0x48] sm:$0xff] %vm2511_vm0, %v2478_v45  ;;  %v2473_v8 = vadd.f32 %v2671_v42, %v2472_v17 }
 0x731   :  { %v3072_v53 = vpop.f32.mrf.mxu0 }
 0x732   :  { %2520 = vst.msk [vmem:[%s4692_s10 + $0x40] sm:$0xff] %vm2511_vm0, %v2473_v8  ;;  %v2488_v18 = vadd.f32 %v3072_v53, %v2671_v42 }
 0x733   :  { %v2482_v1 = vpop.f32.mrf.mxu0 }
 0x734   :  { %2523 = vst.msk [vmem:[%s4692_s10 + $0x58] sm:$0xff] %vm2511_vm0, %v2488_v18  ;;  %v2483_v26 = vadd.f32 %v2671_v42, %v2482_v1 }
 0x735   :  { %v3075_v47 = vpop.f32.mrf.mxu0 }
 0x736   :  { %2522 = vst.msk [vmem:[%s4692_s10 + $0x50] sm:$0xff] %vm2511_vm0, %v2483_v26  ;;  %v2498_v60 = vadd.f32 %v3075_v47, %v2671_v42 }
 0x737   :  { %v2492_v62 = vpop.f32.mrf.mxu0 }
 0x738   :  { %2525 = vst.msk [vmem:[%s4692_s10 + $0x68] sm:$0xff] %vm2511_vm0, %v2498_v60  ;;  %v2493_v58 = vadd.f32 %v2671_v42, %v2492_v62 }
 0x73a   :  { %2524 = vst.msk [vmem:[%s4692_s10 + $0x60] sm:$0xff] %vm2511_vm0, %v2493_v58 }
 0x73c   :  { %v3078_v43 = vpop.f32.mrf.mxu0 }
 0x73d   :  { %v2508_v23 = vadd.f32 %v3078_v43, %v2671_v42 }
 0x73e   :  { %v2502_v50 = vpop.f32.mrf.mxu0 }
 0x73f   :  { %2527 = vst.msk [vmem:[%s4692_s10 + $0x78] sm:$0xff] %vm2511_vm0, %v2508_v23  ;;  %v2503_v9 = vadd.f32 %v2671_v42, %v2502_v50 }
 0x741   :  { %2526 = vst.msk [vmem:[%s4692_s10 + $0x70] sm:$0xff] %vm2511_vm0, %v2503_v9 }

</bundles_post_ra>
